<compile_context>
chip_gen: v7x
topology: tpu7x:2x2x1
jax: 0.10.0
libtpu: 0.0.40
codegen_flags: <defaults>
</compile_context>

<pallas_src>
from functools import partial

import numpy as np
import jax
import jax.numpy as jnp
from jax import lax
from jax.experimental import pallas as pl
from jax.experimental.pallas import tpu as pltpu


# ----------------------------------------------------------------------------
# Bilinear upsample (PyTorch nn.Upsample(size=out, mode='bilinear'),
# align_corners=False) as separable interpolation matrices (trace-time consts).
# ----------------------------------------------------------------------------
def _bilinear_matrix(in_size, out_size):
    scale = in_size / out_size
    dst = np.arange(out_size, dtype=np.float64)
    src = (dst + 0.5) * scale - 0.5
    src = np.maximum(src, 0.0)                      # PyTorch clamps at 0 (non-cubic)
    i0 = np.minimum(np.floor(src).astype(np.int64), in_size - 1)
    i1 = np.minimum(i0 + 1, in_size - 1)
    lam1 = (src - i0).astype(np.float32)
    lam0 = 1.0 - lam1
    W = np.zeros((out_size, in_size), dtype=np.float32)
    np.add.at(W, (np.arange(out_size), i0), lam0)
    np.add.at(W, (np.arange(out_size), i1), lam1)
    return jnp.asarray(W)


def bilinear_upsample_nchw(x, out_size):
    # x: (N, C, H, W) -> (N, C, out_size, out_size)
    _, _, H, W = x.shape
    Wh = _bilinear_matrix(H, out_size)              # (out, H)
    Ww = _bilinear_matrix(W, out_size)              # (out, W)
    return jnp.einsum("oh,nchw,pw->ncop", Wh, x, Ww,
                      precision=lax.Precision.HIGHEST)


# ----------------------------------------------------------------------------
# Pallas kernel: fused 3x3 conv as 9 accumulating dots on a halo-padded tile.
#   x_ref : (1, S+2, S+2, C)  bf16   one batch element, halo-padded NHWC
#   w_ref : (9, C, Cout)      bf16   taps, t = dy*3 + dx
#   o_ref : (1, S*S, Cout)    f32
# ----------------------------------------------------------------------------
def _conv3x3_kernel(x_ref, w_ref, o_ref):
    S = x_ref.shape[1] - 2
    C = x_ref.shape[3]
    Cout = o_ref.shape[2]
    acc = jnp.zeros((S * S, Cout), jnp.float32)
    for dy in range(3):
        for dx in range(3):
            tap = x_ref[0, dy:dy + S, dx:dx + S, :].reshape(S * S, C)
            acc = acc + jnp.dot(tap, w_ref[dy * 3 + dx],
                                preferred_element_type=jnp.float32)
    o_ref[0] = acc


def _conv3x3_pallas(xp_bf16, w9_bf16, S, Cout):
    # xp_bf16: (N, S+2, S+2, C) bf16; w9_bf16: (9, C, Cout) bf16
    N, Hp, Wp, C = xp_bf16.shape
    flops = 2 * N * S * S * 9 * C * Cout
    bytes_accessed = (N * Hp * Wp * C * 2          # bf16 activations (read once)
                      + 9 * C * Cout * 2           # bf16 weights
                      + N * S * S * Cout * 4)      # f32 output
    return pl.pallas_call(
        _conv3x3_kernel,
        out_shape=jax.ShapeDtypeStruct((N, S * S, Cout), jnp.float32),
        grid_spec=pltpu.PrefetchScalarGridSpec(
            num_scalar_prefetch=0,
            grid=(N,),
            in_specs=[
                pl.BlockSpec((1, Hp, Wp, C), lambda n: (n, 0, 0, 0)),
                pl.BlockSpec((9, C, Cout), lambda n: (0, 0, 0)),
            ],
            out_specs=pl.BlockSpec((1, S * S, Cout), lambda n: (n, 0, 0)),
        ),
        compiler_params=pltpu.CompilerParams(
            dimension_semantics=("parallel",),
            vmem_limit_bytes=32 * 1024 * 1024),
        cost_estimate=pl.CostEstimate(
            flops=flops, transcendentals=0, bytes_accessed=bytes_accessed),
    )(xp_bf16, w9_bf16)


# ----------------------------------------------------------------------------
# Whole forward under a single jit: upsample -> concat -> fused conv kernel.
# ----------------------------------------------------------------------------
@partial(jax.jit, static_argnames=("out_size",))
def upsc_forward(x1, x2, w9_bf16, *, out_size):
    # x1: (N, C1, h, w), x2: (N, C2, out_size, out_size)  -- NCHW like PyTorch.
    Cout = w9_bf16.shape[2]
    x1u = bilinear_upsample_nchw(x1, out_size)
    x = jnp.concatenate([x2, x1u], axis=1)              # (N, C, S, S)
    N = x.shape[0]
    S = out_size
    x_nhwc = jnp.transpose(x, (0, 2, 3, 1))             # NHWC for the kernel
    xp = jnp.pad(x_nhwc, ((0, 0), (1, 1), (1, 1), (0, 0)))
    xp = xp.astype(jnp.bfloat16)                        # halve HBM bytes
    y2d = _conv3x3_pallas(xp, w9_bf16, S, Cout)         # (N, S*S, Cout) f32
    y = y2d.reshape(N, S, S, Cout)
    return jnp.transpose(y, (0, 3, 1, 2))               # back to NCHW


class UpSCPallas:
    def __init__(self, in_channels, out_channels, out_size, key):
        self.out_size = out_size
        self.out_channels = out_channels
        # Deterministic init matching PyTorch Conv2d default
        # (kaiming_uniform(a=sqrt(5)) -> U(-1/sqrt(fan_in), 1/sqrt(fan_in))).
        fan_in = in_channels * 3 * 3
        bound = 1.0 / np.sqrt(fan_in)
        w_oihw = jax.random.uniform(
            key, (out_channels, in_channels, 3, 3), jnp.float32, -bound, bound)
        self.w_oihw = w_oihw                             # f32 copy for reference
        # (O, I, 3, 3) -> (dy, dx, I, O) -> (9, I, O); tap t = dy*3 + dx
        w9 = jnp.transpose(w_oihw, (2, 3, 1, 0)).reshape(9, in_channels, out_channels)
        self.w9_bf16 = w9.astype(jnp.bfloat16)

    def __call__(self, x1, x2):
        return upsc_forward(x1, x2, self.w9_bf16, out_size=self.out_size)


# ----------------------------------------------------------------------------
if __name__ == "__main__":
    key = jax.random.PRNGKey(0)
    k1, k2, kw = jax.random.split(key, 3)

    N, C1, C2 = 2, 4, 4              # in_channels = C1 + C2 = 8
    in_size, out_size = 8, 16
    out_channels = 8

    x1 = jax.random.normal(k1, (N, C1, in_size, in_size), jnp.float32)
    x2 = jax.random.normal(k2, (N, C2, out_size, out_size), jnp.float32)

    model = UpSCPallas(C1 + C2, out_channels, out_size, kw)
    y = jax.block_until_ready(model(x1, x2))
    assert y.shape == (N, out_channels, out_size, out_size), y.shape

    # --- References (same semantics as the PyTorch forward) ---
    x1u = bilinear_upsample_nchw(x1, out_size)
    x_cat = jnp.concatenate([x2, x1u], axis=1)

    # (a) kernel-exactness check: same bf16-rounded operands, f32 accumulation.
    x_bf = x_cat.astype(jnp.bfloat16).astype(jnp.float32)
    w_bf = model.w_oihw.astype(jnp.bfloat16).astype(jnp.float32)
    y_ref_bf = lax.conv_general_dilated(
        x_bf, w_bf, window_strides=(1, 1), padding="SAME",
        dimension_numbers=("NCHW", "OIHW", "NCHW"),
        precision=lax.Precision.HIGHEST)
    np.testing.assert_allclose(np.asarray(y), np.asarray(y_ref_bf),
                               rtol=5e-3, atol=5e-3)

    # (b) full-f32 semantic check (loose tolerance absorbs intentional bf16 cast).
    y_ref_f32 = lax.conv_general_dilated(
        x_cat, model.w_oihw, window_strides=(1, 1), padding="SAME",
        dimension_numbers=("NCHW", "OIHW", "NCHW"),
        precision=lax.Precision.HIGHEST)
    np.testing.assert_allclose(np.asarray(y), np.asarray(y_ref_f32),
                               rtol=2e-2, atol=2e-2)

    print("KERNEL_OK")
</pallas_src>

<mosaic_0001>
module attributes {stable_mosaic.version = 11 : i64} {
  func.func @_conv3x3_kernel(%arg0: i32, %arg1: memref<1x18x18x8xbf16, #tpu.memory_space<vmem>>, %arg2: memref<9x8x8xbf16, #tpu.memory_space<vmem>>, %arg3: memref<1x256x8xf32, #tpu.memory_space<vmem>>) attributes {dimension_semantics = [#tpu.dimension_semantics<parallel>], iteration_bounds = array<i64: 2>, scalar_prefetch = 0 : i64, scratch_operands = 0 : i64, tpu.core_type = #tpu.core_type<tc>, window_params = [{transform_indices = @transform_0, window_bounds = array<i64: 1, 18, 18, 8>}, {pipeline_mode = #tpu.pipeline_mode<synchronous>, transform_indices = @transform_1, window_bounds = array<i64: 9, 8, 8>}, {transform_indices = @transform_2, window_bounds = array<i64: 1, 256, 8>}]} {
    %cst = arith.constant 0.000000e+00 : f32
    %0 = vector.broadcast %cst : f32 to vector<256x8xf32>
    %c0 = arith.constant 0 : index
    %c0_0 = arith.constant 0 : index
    %c0_1 = arith.constant 0 : index
    %c0_2 = arith.constant 0 : index
    %1 = vector.load %arg1[%c0, %c0_0, %c0_1, %c0_2] : memref<1x18x18x8xbf16, #tpu.memory_space<vmem>>, vector<1x16x16x8xbf16>
    %2 = vector.shape_cast %1 : vector<1x16x16x8xbf16> to vector<16x16x8xbf16>
    %3 = vector.shape_cast %2 : vector<16x16x8xbf16> to vector<256x8xbf16>
    %c0_3 = arith.constant 0 : index
    %c0_4 = arith.constant 0 : index
    %c0_5 = arith.constant 0 : index
    %4 = vector.load %arg2[%c0_3, %c0_4, %c0_5] : memref<9x8x8xbf16, #tpu.memory_space<vmem>>, vector<1x8x8xbf16>
    %5 = vector.shape_cast %4 : vector<1x8x8xbf16> to vector<8x8xbf16>
    %cst_6 = arith.constant dense<0.000000e+00> : vector<256x8xf32>
    %6 = tpu.matmul %3, %5, %cst_6 {dimension_numbers = #tpu.dot_dimension_numbers<[1], [0], [0], [1], [0, 0, 1, 1], [], []>} : vector<256x8xbf16>, vector<8x8xbf16>, vector<256x8xf32> -> vector<256x8xf32>
    %7 = arith.addf %0, %6 : vector<256x8xf32>
    %c0_7 = arith.constant 0 : index
    %c0_8 = arith.constant 0 : index
    %c1 = arith.constant 1 : index
    %c0_9 = arith.constant 0 : index
    %8 = vector.load %arg1[%c0_7, %c0_8, %c1, %c0_9] : memref<1x18x18x8xbf16, #tpu.memory_space<vmem>>, vector<1x16x16x8xbf16>
    %9 = vector.shape_cast %8 : vector<1x16x16x8xbf16> to vector<16x16x8xbf16>
    %10 = vector.shape_cast %9 : vector<16x16x8xbf16> to vector<256x8xbf16>
    %c1_10 = arith.constant 1 : index
    %c0_11 = arith.constant 0 : index
    %c0_12 = arith.constant 0 : index
    %11 = vector.load %arg2[%c1_10, %c0_11, %c0_12] : memref<9x8x8xbf16, #tpu.memory_space<vmem>>, vector<1x8x8xbf16>
    %12 = vector.shape_cast %11 : vector<1x8x8xbf16> to vector<8x8xbf16>
    %cst_13 = arith.constant dense<0.000000e+00> : vector<256x8xf32>
    %13 = tpu.matmul %10, %12, %cst_13 {dimension_numbers = #tpu.dot_dimension_numbers<[1], [0], [0], [1], [0, 0, 1, 1], [], []>} : vector<256x8xbf16>, vector<8x8xbf16>, vector<256x8xf32> -> vector<256x8xf32>
    %14 = arith.addf %7, %13 : vector<256x8xf32>
    %c0_14 = arith.constant 0 : index
    %c0_15 = arith.constant 0 : index
    %c2 = arith.constant 2 : index
    %c0_16 = arith.constant 0 : index
    %15 = vector.load %arg1[%c0_14, %c0_15, %c2, %c0_16] : memref<1x18x18x8xbf16, #tpu.memory_space<vmem>>, vector<1x16x16x8xbf16>
    %16 = vector.shape_cast %15 : vector<1x16x16x8xbf16> to vector<16x16x8xbf16>
    %17 = vector.shape_cast %16 : vector<16x16x8xbf16> to vector<256x8xbf16>
    %c2_17 = arith.constant 2 : index
    %c0_18 = arith.constant 0 : index
    %c0_19 = arith.constant 0 : index
    %18 = vector.load %arg2[%c2_17, %c0_18, %c0_19] : memref<9x8x8xbf16, #tpu.memory_space<vmem>>, vector<1x8x8xbf16>
    %19 = vector.shape_cast %18 : vector<1x8x8xbf16> to vector<8x8xbf16>
    %cst_20 = arith.constant dense<0.000000e+00> : vector<256x8xf32>
    %20 = tpu.matmul %17, %19, %cst_20 {dimension_numbers = #tpu.dot_dimension_numbers<[1], [0], [0], [1], [0, 0, 1, 1], [], []>} : vector<256x8xbf16>, vector<8x8xbf16>, vector<256x8xf32> -> vector<256x8xf32>
    %21 = arith.addf %14, %20 : vector<256x8xf32>
    %c0_21 = arith.constant 0 : index
    %c1_22 = arith.constant 1 : index
    %c0_23 = arith.constant 0 : index
    %c0_24 = arith.constant 0 : index
    %22 = vector.load %arg1[%c0_21, %c1_22, %c0_23, %c0_24] : memref<1x18x18x8xbf16, #tpu.memory_space<vmem>>, vector<1x16x16x8xbf16>
    %23 = vector.shape_cast %22 : vector<1x16x16x8xbf16> to vector<16x16x8xbf16>
    %24 = vector.shape_cast %23 : vector<16x16x8xbf16> to vector<256x8xbf16>
    %c3 = arith.constant 3 : index
    %c0_25 = arith.constant 0 : index
    %c0_26 = arith.constant 0 : index
    %25 = vector.load %arg2[%c3, %c0_25, %c0_26] : memref<9x8x8xbf16, #tpu.memory_space<vmem>>, vector<1x8x8xbf16>
    %26 = vector.shape_cast %25 : vector<1x8x8xbf16> to vector<8x8xbf16>
    %cst_27 = arith.constant dense<0.000000e+00> : vector<256x8xf32>
    %27 = tpu.matmul %24, %26, %cst_27 {dimension_numbers = #tpu.dot_dimension_numbers<[1], [0], [0], [1], [0, 0, 1, 1], [], []>} : vector<256x8xbf16>, vector<8x8xbf16>, vector<256x8xf32> -> vector<256x8xf32>
    %28 = arith.addf %21, %27 : vector<256x8xf32>
    %c0_28 = arith.constant 0 : index
    %c1_29 = arith.constant 1 : index
    %c1_30 = arith.constant 1 : index
    %c0_31 = arith.constant 0 : index
    %29 = vector.load %arg1[%c0_28, %c1_29, %c1_30, %c0_31] : memref<1x18x18x8xbf16, #tpu.memory_space<vmem>>, vector<1x16x16x8xbf16>
    %30 = vector.shape_cast %29 : vector<1x16x16x8xbf16> to vector<16x16x8xbf16>
    %31 = vector.shape_cast %30 : vector<16x16x8xbf16> to vector<256x8xbf16>
    %c4 = arith.constant 4 : index
    %c0_32 = arith.constant 0 : index
    %c0_33 = arith.constant 0 : index
    %32 = vector.load %arg2[%c4, %c0_32, %c0_33] : memref<9x8x8xbf16, #tpu.memory_space<vmem>>, vector<1x8x8xbf16>
    %33 = vector.shape_cast %32 : vector<1x8x8xbf16> to vector<8x8xbf16>
    %cst_34 = arith.constant dense<0.000000e+00> : vector<256x8xf32>
    %34 = tpu.matmul %31, %33, %cst_34 {dimension_numbers = #tpu.dot_dimension_numbers<[1], [0], [0], [1], [0, 0, 1, 1], [], []>} : vector<256x8xbf16>, vector<8x8xbf16>, vector<256x8xf32> -> vector<256x8xf32>
    %35 = arith.addf %28, %34 : vector<256x8xf32>
    %c0_35 = arith.constant 0 : index
    %c1_36 = arith.constant 1 : index
    %c2_37 = arith.constant 2 : index
    %c0_38 = arith.constant 0 : index
    %36 = vector.load %arg1[%c0_35, %c1_36, %c2_37, %c0_38] : memref<1x18x18x8xbf16, #tpu.memory_space<vmem>>, vector<1x16x16x8xbf16>
    %37 = vector.shape_cast %36 : vector<1x16x16x8xbf16> to vector<16x16x8xbf16>
    %38 = vector.shape_cast %37 : vector<16x16x8xbf16> to vector<256x8xbf16>
    %c5 = arith.constant 5 : index
    %c0_39 = arith.constant 0 : index
    %c0_40 = arith.constant 0 : index
    %39 = vector.load %arg2[%c5, %c0_39, %c0_40] : memref<9x8x8xbf16, #tpu.memory_space<vmem>>, vector<1x8x8xbf16>
    %40 = vector.shape_cast %39 : vector<1x8x8xbf16> to vector<8x8xbf16>
    %cst_41 = arith.constant dense<0.000000e+00> : vector<256x8xf32>
    %41 = tpu.matmul %38, %40, %cst_41 {dimension_numbers = #tpu.dot_dimension_numbers<[1], [0], [0], [1], [0, 0, 1, 1], [], []>} : vector<256x8xbf16>, vector<8x8xbf16>, vector<256x8xf32> -> vector<256x8xf32>
    %42 = arith.addf %35, %41 : vector<256x8xf32>
    %c0_42 = arith.constant 0 : index
    %c2_43 = arith.constant 2 : index
    %c0_44 = arith.constant 0 : index
    %c0_45 = arith.constant 0 : index
    %43 = vector.load %arg1[%c0_42, %c2_43, %c0_44, %c0_45] : memref<1x18x18x8xbf16, #tpu.memory_space<vmem>>, vector<1x16x16x8xbf16>
    %44 = vector.shape_cast %43 : vector<1x16x16x8xbf16> to vector<16x16x8xbf16>
    %45 = vector.shape_cast %44 : vector<16x16x8xbf16> to vector<256x8xbf16>
    %c6 = arith.constant 6 : index
    %c0_46 = arith.constant 0 : index
    %c0_47 = arith.constant 0 : index
    %46 = vector.load %arg2[%c6, %c0_46, %c0_47] : memref<9x8x8xbf16, #tpu.memory_space<vmem>>, vector<1x8x8xbf16>
    %47 = vector.shape_cast %46 : vector<1x8x8xbf16> to vector<8x8xbf16>
    %cst_48 = arith.constant dense<0.000000e+00> : vector<256x8xf32>
    %48 = tpu.matmul %45, %47, %cst_48 {dimension_numbers = #tpu.dot_dimension_numbers<[1], [0], [0], [1], [0, 0, 1, 1], [], []>} : vector<256x8xbf16>, vector<8x8xbf16>, vector<256x8xf32> -> vector<256x8xf32>
    %49 = arith.addf %42, %48 : vector<256x8xf32>
    %c0_49 = arith.constant 0 : index
    %c2_50 = arith.constant 2 : index
    %c1_51 = arith.constant 1 : index
    %c0_52 = arith.constant 0 : index
    %50 = vector.load %arg1[%c0_49, %c2_50, %c1_51, %c0_52] : memref<1x18x18x8xbf16, #tpu.memory_space<vmem>>, vector<1x16x16x8xbf16>
    %51 = vector.shape_cast %50 : vector<1x16x16x8xbf16> to vector<16x16x8xbf16>
    %52 = vector.shape_cast %51 : vector<16x16x8xbf16> to vector<256x8xbf16>
    %c7 = arith.constant 7 : index
    %c0_53 = arith.constant 0 : index
    %c0_54 = arith.constant 0 : index
    %53 = vector.load %arg2[%c7, %c0_53, %c0_54] : memref<9x8x8xbf16, #tpu.memory_space<vmem>>, vector<1x8x8xbf16>
    %54 = vector.shape_cast %53 : vector<1x8x8xbf16> to vector<8x8xbf16>
    %cst_55 = arith.constant dense<0.000000e+00> : vector<256x8xf32>
    %55 = tpu.matmul %52, %54, %cst_55 {dimension_numbers = #tpu.dot_dimension_numbers<[1], [0], [0], [1], [0, 0, 1, 1], [], []>} : vector<256x8xbf16>, vector<8x8xbf16>, vector<256x8xf32> -> vector<256x8xf32>
    %56 = arith.addf %49, %55 : vector<256x8xf32>
    %c0_56 = arith.constant 0 : index
    %c2_57 = arith.constant 2 : index
    %c2_58 = arith.constant 2 : index
    %c0_59 = arith.constant 0 : index
    %57 = vector.load %arg1[%c0_56, %c2_57, %c2_58, %c0_59] : memref<1x18x18x8xbf16, #tpu.memory_space<vmem>>, vector<1x16x16x8xbf16>
    %58 = vector.shape_cast %57 : vector<1x16x16x8xbf16> to vector<16x16x8xbf16>
    %59 = vector.shape_cast %58 : vector<16x16x8xbf16> to vector<256x8xbf16>
    %c8 = arith.constant 8 : index
    %c0_60 = arith.constant 0 : index
    %c0_61 = arith.constant 0 : index
    %60 = vector.load %arg2[%c8, %c0_60, %c0_61] : memref<9x8x8xbf16, #tpu.memory_space<vmem>>, vector<1x8x8xbf16>
    %61 = vector.shape_cast %60 : vector<1x8x8xbf16> to vector<8x8xbf16>
    %cst_62 = arith.constant dense<0.000000e+00> : vector<256x8xf32>
    %62 = tpu.matmul %59, %61, %cst_62 {dimension_numbers = #tpu.dot_dimension_numbers<[1], [0], [0], [1], [0, 0, 1, 1], [], []>} : vector<256x8xbf16>, vector<8x8xbf16>, vector<256x8xf32> -> vector<256x8xf32>
    %63 = arith.addf %56, %62 : vector<256x8xf32>
    %c0_63 = arith.constant 0 : index
    %c0_64 = arith.constant 0 : index
    %c0_65 = arith.constant 0 : index
    %64 = vector.load %arg3[%c0_63, %c0_64, %c0_65] : memref<1x256x8xf32, #tpu.memory_space<vmem>>, vector<1x256x8xf32>
    %65 = vector.shape_cast %64 : vector<1x256x8xf32> to vector<256x8xf32>
    %66 = vector.shape_cast %63 : vector<256x8xf32> to vector<1x256x8xf32>
    tpu.vector_store %arg3[%c0_63, %c0_64, %c0_65], %66 {strides = array<i32>} : memref<1x256x8xf32, #tpu.memory_space<vmem>>, vector<1x256x8xf32>,
    return
  }
  func.func @transform_0(%arg0: i32) -> (i32, i32, i32, i32) {
    %c0_i32 = arith.constant 0 : i32
    %c0_i32_0 = arith.constant 0 : i32
    %c0_i32_1 = arith.constant 0 : i32
    %c0_i32_2 = arith.constant 0 : i32
    return %arg0, %c0_i32, %c0_i32_0, %c0_i32_1 : i32, i32, i32, i32
  }
  func.func @transform_1(%arg0: i32) -> (i32, i32, i32) {
    %c0_i32 = arith.constant 0 : i32
    %c0_i32_0 = arith.constant 0 : i32
    %c0_i32_1 = arith.constant 0 : i32
    %c0_i32_2 = arith.constant 0 : i32
    return %c0_i32, %c0_i32_0, %c0_i32_1 : i32, i32, i32
  }
  func.func @transform_2(%arg0: i32) -> (i32, i32, i32) {
    %c0_i32 = arith.constant 0 : i32
    %c0_i32_0 = arith.constant 0 : i32
    %c0_i32_1 = arith.constant 0 : i32
    return %arg0, %c0_i32, %c0_i32_0 : i32, i32, i32
  }
}

</mosaic_0001>

<bundles_post_ra>
// kernel: upsc_forward.1
= control target key start
LH: loop header
LB: loop body
LE: loop exit
PB: predicated region body
PF: predicated region fallthrough
CT: control target
= control target key end

     0   :  { %s6202_s9 = smov 0   ;;  %s7986_s0 = inlined_call_operand.vmem [shape: bf16[2,18,18,8], index: 0, kind: input, shape index: {}]   ;;  %s7987_s1 = inlined_call_operand.vmem [shape: bf16[9,8,8], index: 1, kind: input, shape index: {}]   ;;  %s7988_s2 = inlined_call_operand.vmem [shape: f32[2,256,8], index: 2, kind: output, shape index: {}]  }
   0x1 LB: > { %s4791_s10 = sadd.s32 4294967295, %s6185_s9   ;;  %p4795_p0 = scmp.ge.s32.totalorder %s6185_s9, 1  ;;  %s6185_s9 = sphi %s6202_s9, %s12_s9  }
   0x2   : > { %p112_p1 = scmp.lt.s32.totalorder %s6185_s9, 3 }
   0x4   : > { %p113_p2 = pnand %p4795_p0, %p112_p1 }
   0x6   : > { %116 = sbr.rel (%p113_p2) target bundleno = 583 (0x247), region = 28 }
   0xd   : > { %v4799_v0 = vld [vmem:[%s7987_s1 + $0x4] sm:$0xf]  ;;  %vm680_vm0 = vcmask 1043456   ;;  %v5026_v1 = vld [vmem:[%s7987_s1 + $0x10] sm:$0xf]  ;;  %p134_p3 = scmp.lt.s32.totalorder %s4791_s10, 1 }
   0xe   : > { %6055 = vmatprep.subr.msk.bf16.mxu1 %vm680_vm0, %v4799_v0  ;;  %6059 = vmatprep.subr.msk.bf16.mxu0 %vm680_vm0, %v5026_v1  ;;  %v682_v2 = vsel %vm680_vm0, %v4799_v0, 0  ;;  %v6220_v3 = vsel %vm680_vm0, %v5026_v1, 0  ;;  %v177_v4 = vld [vmem:[%s7987_s1] sm:$0xf]  ;;  %v5091_v5 = vld [vmem:[%s7987_s1 + $0x14] sm:$0xf] }
   0xf   : > { %8002 = vst [vmem:[#allocation2_spill] sm:$0xff] %v6220_v3  ;;  %5492 = vmatpush3.bf16.msra.mxu1 %v682_v2  ;;  %5628 = vmatpush3.bf16.msra.mxu0 %v6220_v3  ;;  %s8057_s10 = smov (!%p134_p3, %s4791_s10), 1  ;;  %vm194_vm1 = vsmask.f32 3328  ;;  %vm195_vm2 = vsmask.f32 7440 }
  0x10   : > { %6056 = vmatprep.subr.msk.bf16.mxu1 %vm680_vm0, %v177_v4  ;;  %6061 = vmatprep.subr.msk.bf16.mxu0 %vm680_vm0, %v5091_v5  ;;  %s6065_s19 = smul.u32 216, %s8057_s10  ;;  %vm631_vm3 = vcmask 64512   ;;  %v6250_v17 = vsel %vm680_vm0, %v177_v4, 0  ;;  %v6256_v26 = vld [vmem:[%s7987_s1 + $0x18] sm:$0xf]  ;;  %vm6263_vm4 = vmor %vm194_vm1, %vm195_vm2  ;;  %v6269_v37 = vsel %vm680_vm0, %v5091_v5, 0 }
  0x11   : > { %v6273_v41 = vsel %vm680_vm0, %v6256_v26, 0  ;;  %vm1185_vm5 = vcmask 1042432   ;;  %vm1186_vm6 = vcmask 1046532   ;;  %s5337_s11 = sshll.u32 %s8057_s10, 8 }
  0x12   : > { %s6237_s22 = scalar_lea.vmem %s7986_s0, %s6065_s19  ;;  %vm6489_vm7 = vmor %vm1185_vm5, %vm1186_vm6  ;;  %s7917_s14 = scalar_lea.vmem %s7988_s2, %s5337_s11 }
  0x13   : > { %v145_v6 = vld [vmem:[%s6237_s22] sm:$0xf]  ;;  %v146_v7 = vld [vmem:[%s6237_s22 + $0x4] sm:$0xf]  ;;  %v178_v8 = vld [vmem:[%s6237_s22 + $0x8] sm:$0x1] }
  0x14   : > { %v198_v9 = vshrl.u32 %v145_v6, 16  ;;  %v201_v10 = vshll.u32 %v145_v6, 16  ;;  %v207_v11 = vshll.u32 %v146_v7, 16  ;;  %v211_v12 = vshrl.u32 %v146_v7, 16  ;;  %v4978_v13 = vld [vmem:[%s6237_s22 + $0xc] sm:$0xf] }
  0x15   : > { %v217_v14 = vshll.u32 %v178_v8, 16  ;;  %v6244_v15 = vld [vmem:[%s6237_s22 + $0x10] sm:$0xf]  ;;  %v6247_v16 = vld [vmem:[%s6237_s22 + $0x14] sm:$0x1]  ;;  %v2002_v23 = vshrl.u32 %v4978_v13, 16 }
  0x16   : > { %v200_v18 = vrot.slane %v198_v9, 4  ;;  %v203_v19 = vrot.slane %v201_v10, 5  ;;  %v209_v20 = vrot.slane %v207_v11, 5  ;;  %v213_v21 = vrot.slane %v211_v12, 4  ;;  %v147_v31 = vld [vmem:[%s6237_s22 + $0xc] sm:$0xf] }
  0x17   : > { %v219_v22 = vrot.slane %v217_v14, 5  ;;  %v2005_v24 = vshll.u32 %v4978_v13, 16  ;;  %v2011_v25 = vshll.u32 %v6244_v15, 16  ;;  %v2015_v29 = vshrl.u32 %v6244_v15, 16  ;;  %v148_v36 = vld [vmem:[%s6237_s22 + $0x10] sm:$0xf] }
  0x18   : > { %v204_v27 = vor.u32 %v203_v19, %v200_v18  ;;  %v214_v28 = vor.u32 %v213_v21, %v209_v20  ;;  %v2021_v30 = vshll.u32 %v6247_v16, 16  ;;  %v2004_v33 = vrot.slane %v2002_v23, 4  ;;  %v179_v44 = vld [vmem:[%s6237_s22 + $0x14] sm:$0x1]  ;;  %v4981_v55 = vld [vmem:[%s6237_s22 + $0x18] sm:$0xf] }
  0x19   : > { %v2007_v34 = vrot.slane %v2005_v24, 5  ;;  %v2013_v35 = vrot.slane %v2011_v25, 5  ;;  %v2017_v40 = vrot.slane %v2015_v29, 4  ;;  %v222_v45 = vshrl.u32 %v147_v31, 16  ;;  %v6282_v60 = vld [vmem:[%s6237_s22 + $0x1c] sm:$0xf] }
  0x1a   : > { %v205_v38 = vrot.slane %v204_v27, 4  ;;  %v215_v39 = vrot.slane %v214_v28, 4  ;;  %v2023_v43 = vrot.slane %v2021_v30, 5  ;;  %v225_v46 = vshll.u32 %v147_v31, 16  ;;  %v6290_v1 = vld [vmem:[%s6237_s22 + $0x20] sm:$0x1] }
  0x1b   : > { %v2008_v42 = vor.u32 %v2007_v34, %v2004_v33  ;;  %v2018_v49 = vor.u32 %v2017_v40, %v2013_v35  ;;  %v231_v50 = vshll.u32 %v148_v36, 16  ;;  %v224_v53 = vrot.slane %v222_v45, 4  ;;  %v149_v18 = vld [vmem:[%s6237_s22 + $0x18] sm:$0xf]  ;;  %v150_v23 = vld [vmem:[%s6237_s22 + $0x1c] sm:$0xf] }
  0x1c   : > { %v210_v47 = vsel %vm6263_vm4, %v205_v38, %v209_v20  ;;  %v220_v48 = vsel %vm6263_vm4, %v215_v39, %v219_v22  ;;  %v227_v54 = vrot.slane %v225_v46, 5  ;;  %v235_v58 = vshrl.u32 %v148_v36, 16  ;;  %v180_v31 = vld [vmem:[%s6237_s22 + $0x20] sm:$0x1]  ;;  %v4984_v40 = vld [vmem:[%s6237_s22 + $0x24] sm:$0xf] }
  0x1d   : > { %v4800_v51 = vcombine.low %v210_v47, %v220_v48  ;;  %v2009_v52 = vrot.slane %v2008_v42, 4  ;;  %v2019_v56 = vrot.slane %v2018_v49, 4  ;;  %v233_v57 = vrot.slane %v231_v50, 5  ;;  %v6313_v46 = vld [vmem:[%s6237_s22 + $0x28] sm:$0xf] }
  0x1e   : > { %v241_v59 = vshll.u32 %v179_v44, 16  ;;  %v2745_v62 = vrot.slane %v6244_v15, 5  ;;  %v2748_v63 = vrot.slane %v6247_v16, 5  ;;  %v228_v0 = vor.u32 %v227_v54, %v224_v53  ;;  %v6322_v54 = vld [vmem:[%s6237_s22 + $0x2c] sm:$0x1] }
  0x1f   : > { %5493 = vmatprep.mubr.msk.bf16.mxu1 %vm631_vm3, %v4800_v51  ;;  %v2014_v61 = vsel %vm6263_vm4, %v2009_v52, %v2013_v35  ;;  %v2024_v2 = vsel %vm6263_vm4, %v2019_v56, %v2023_v43  ;;  %v237_v4 = vrot.slane %v235_v58, 4  ;;  %v2026_v6 = vshrl.u32 %v4981_v55, 16  ;;  %v4880_v51 = vld [vmem:[%s7987_s1 + $0x8] sm:$0xf]  ;;  %v6522_v16 = vld [vmem:[%s6237_s22 + $0x7c] sm:$0xf] }
  0x20   : > { %v243_v5 = vrot.slane %v241_v59, 5  ;;  %v5027_v7 = vcombine.low %v2014_v61, %v2024_v2  ;;  %v229_v8 = vrot.slane %v228_v0, 4  ;;  %v2029_v9 = vshll.u32 %v4981_v55, 16  ;;  %v151_v0 = vld [vmem:[%s6237_s22 + $0x24] sm:$0xf] }
  0x21   : > { %v2035_v10 = vshll.u32 %v6282_v60, 16  ;;  %v238_v11 = vor.u32 %v237_v4, %v233_v57  ;;  %v2028_v12 = vrot.slane %v2026_v6, 4  ;;  %v2039_v13 = vshrl.u32 %v6282_v60, 16 }
  0x22   : > { %v2045_v14 = vshll.u32 %v6290_v1, 16  ;;  %5629 = vmatprep.mubr.msk.bf16.mxu0 %vm631_vm3, %v5027_v7  ;;  %v234_v19 = vsel %vm6263_vm4, %v229_v8, %v233_v57  ;;  %v2031_v20 = vrot.slane %v2029_v9, 5  ;;  %v2752_v22 = vrot.slane %v6282_v60, 5  ;;  %v152_v7 = vld [vmem:[%s6237_s22 + $0x28] sm:$0xf] }
  0x23   : > { %v2037_v21 = vrot.slane %v2035_v10, 5  ;;  %v239_v24 = vrot.slane %v238_v11, 4  ;;  %v2041_v25 = vrot.slane %v2039_v13, 4  ;;  %v2755_v28 = vrot.slane %v6290_v1, 5  ;;  %v181_v13 = vld [vmem:[%s6237_s22 + $0x2c] sm:$0x1] }
  0x24   : > { %v2047_v27 = vrot.slane %v2045_v14, 5  ;;  %v2032_v29 = vor.u32 %v2031_v20, %v2028_v12  ;;  %v6306_v30 = vrot.slane %v2752_v22, 4  ;;  %v246_v33 = vshrl.u32 %v149_v18, 16 }
  0x25   : > { %v249_v34 = vshll.u32 %v149_v18, 16  ;;  %v244_v35 = vsel %vm6263_vm4, %v239_v24, %v243_v5  ;;  %v2042_v36 = vor.u32 %v2041_v25, %v2037_v21  ;;  %v255_v38 = vshll.u32 %v150_v23, 16  ;;  %v4987_v24 = vld [vmem:[%s6237_s22 + $0x30] sm:$0xf] }
  0x26   : > { %v259_v39 = vshrl.u32 %v150_v23, 16  ;;  %v4801_v42 = vcombine.low %v234_v19, %v244_v35  ;;  %v2033_v43 = vrot.slane %v2032_v29, 4  ;;  %v248_v44 = vrot.slane %v246_v33, 4  ;;  %v6342_v33 = vld [vmem:[%s6237_s22 + $0x34] sm:$0xf] }
  0x27   : > { %v251_v45 = vrot.slane %v249_v34, 5  ;;  %v2043_v47 = vrot.slane %v2042_v36, 4  ;;  %v257_v48 = vrot.slane %v255_v38, 5  ;;  %v265_v50 = vshll.u32 %v180_v31, 16 }
  0x28   : > { %v261_v49 = vrot.slane %v259_v39, 4  ;;  %5494 = vmatmul.mubr.msk.bf16.vlgmr.msra.gmra.mrb[0].mxu1 %vm631_vm3, %v4801_v42  ;;  %v2038_v52 = vsel %vm6263_vm4, %v2033_v43, %v2037_v21  ;;  %v2050_v55 = vshrl.u32 %v4984_v40, 16  ;;  %v2053_v56 = vshll.u32 %v4984_v40, 16  ;;  %v6350_v40 = vld [vmem:[%s6237_s22 + $0x38] sm:$0x1] }
  0x29   : > { %v252_v53 = vor.u32 %v251_v45, %v248_v44  ;;  %5526 = vmatpush3.bf16.msra.mxu1 %v6250_v17  ;;  %v2048_v57 = vsel %vm6263_vm4, %v2043_v47, %v2047_v27  ;;  %v267_v59 = vrot.slane %v265_v50, 5  ;;  %v2059_v61 = vshll.u32 %v6313_v46, 16 }
  0x2a   : > { %v262_v58 = vor.u32 %v261_v49, %v257_v48  ;;  %v5028_v2 = vcombine.low %v2038_v52, %v2048_v57  ;;  %v2052_v5 = vrot.slane %v2050_v55, 4  ;;  %v2055_v6 = vrot.slane %v2053_v56, 5  ;;  %6057 = vmatprep.subr.msk.bf16.mxu1 %vm680_vm0, %v4880_v51  ;;  %v153_v52 = vld [vmem:[%s6237_s22 + $0x30] sm:$0xf] }
  0x2b   : > { %v253_v4 = vrot.slane %v252_v53, 4  ;;  %v2061_v9 = vrot.slane %v2059_v61, 5  ;;  %v2063_v17 = vshrl.u32 %v6313_v46, 16  ;;  %v2069_v10 = vshll.u32 %v6322_v54, 16 }
  0x2c   : > { %v263_v8 = vrot.slane %v262_v58, 4  ;;  %5630 = vmatmul.mubr.msk.bf16.vlgmr.msra.gmra.mrb[0].mxu0 %vm631_vm3, %v5028_v2  ;;  %v2056_v12 = vor.u32 %v2055_v6, %v2052_v5  ;;  %v270_v14 = vshrl.u32 %v151_v0, 16  ;;  %v273_v18 = vshll.u32 %v151_v0, 16  ;;  %v154_v58 = vld [vmem:[%s6237_s22 + $0x34] sm:$0xf] }
  0x2d   : > { %v258_v11 = vsel %vm6263_vm4, %v253_v4, %v257_v48  ;;  %5662 = vmatpush3.bf16.msra.mxu0 %v6269_v37  ;;  %v2065_v20 = vrot.slane %v2063_v17, 4  ;;  %v2071_v21 = vrot.slane %v2069_v10, 5  ;;  %v279_v23 = vshll.u32 %v152_v7, 16  ;;  %v182_v4 = vld [vmem:[%s6237_s22 + $0x38] sm:$0x1] }
  0x2e   : > { %v268_v19 = vsel %vm6263_vm4, %v263_v8, %v267_v59  ;;  %v2057_v27 = vrot.slane %v2056_v12, 4  ;;  %v272_v29 = vrot.slane %v270_v14, 4  ;;  %v275_v31 = vrot.slane %v273_v18, 5  ;;  %6062 = vmatprep.subr.msk.bf16.mxu0 %vm680_vm0, %v6256_v26  ;;  %v4990_v12 = vld [vmem:[%s6237_s22 + $0x3c] sm:$0xf] }
  0x2f   : > { %v4802_v25 = vcombine.low %v258_v11, %v268_v19  ;;  %v2066_v34 = vor.u32 %v2065_v20, %v2061_v9  ;;  %v281_v35 = vrot.slane %v279_v23, 5  ;;  %v283_v37 = vshrl.u32 %v152_v7, 16  ;;  %v6367_v20 = vld [vmem:[%s6237_s22 + $0x40] sm:$0xf] }
  0x30   : > { %v289_v36 = vshll.u32 %v181_v13, 16  ;;  %v2062_v38 = vsel %vm6263_vm4, %v2057_v27, %v2061_v9  ;;  %v276_v39 = vor.u32 %v275_v31, %v272_v29  ;;  %v2074_v42 = vshrl.u32 %v4987_v24, 16 }
  0x31   : > { %5497 = vmatprep.mubr.msk.bf16.mxu1 %vm631_vm3, %v4802_v25  ;;  %v2077_v43 = vshll.u32 %v4987_v24, 16  ;;  %v2067_v44 = vrot.slane %v2066_v34, 4  ;;  %v285_v45 = vrot.slane %v283_v37, 4  ;;  %v2083_v26 = vshll.u32 %v6342_v33, 16  ;;  %v6372_v34 = vld [vmem:[%s6237_s22 + $0x44] sm:$0x1] }
  0x32   : > { %v291_v47 = vrot.slane %v289_v36, 5  ;;  %v277_v48 = vrot.slane %v276_v39, 4  ;;  %v2076_v49 = vrot.slane %v2074_v42, 4  ;;  %v2087_v51 = vshrl.u32 %v6342_v33, 16  ;;  %v155_v42 = vld [vmem:[%s6237_s22 + $0x3c] sm:$0xf] }
  0x33   : > { %v2079_v50 = vrot.slane %v2077_v43, 5  ;;  %v2072_v53 = vsel %vm6263_vm4, %v2067_v44, %v2071_v21  ;;  %v286_v55 = vor.u32 %v285_v45, %v281_v35  ;;  %v2085_v56 = vrot.slane %v2083_v26, 5  ;;  %v156_v26 = vld [vmem:[%s6237_s22 + $0x40] sm:$0xf] }
  0x34   : > { %v2093_v57 = vshll.u32 %v6350_v40, 16  ;;  %v5029_v59 = vcombine.low %v2062_v38, %v2072_v53  ;;  %v282_v61 = vsel %vm6263_vm4, %v277_v48, %v281_v35  ;;  %v2089_v2 = vrot.slane %v2087_v51, 4 }
  0x35   : > { %v2080_v0 = vor.u32 %v2079_v50, %v2076_v49  ;;  %v287_v5 = vrot.slane %v286_v55, 4  ;;  %v294_v7 = vshrl.u32 %v153_v52, 16  ;;  %v297_v8 = vshll.u32 %v153_v52, 16 }
  0x36   : > { %v2095_v6 = vrot.slane %v2093_v57, 5  ;;  %5633 = vmatprep.mubr.msk.bf16.mxu0 %vm631_vm3, %v5029_v59  ;;  %v2090_v17 = vor.u32 %v2089_v2, %v2085_v56  ;;  %v303_v10 = vshll.u32 %v154_v58, 16  ;;  %v307_v11 = vshrl.u32 %v154_v58, 16  ;;  %v4993_v2 = vld [vmem:[%s6237_s22 + $0x48] sm:$0xf] }
  0x37   : > { %v2081_v9 = vrot.slane %v2080_v0, 4  ;;  %v292_v13 = vsel %vm6263_vm4, %v287_v5, %v291_v47  ;;  %v296_v14 = vrot.slane %v294_v7, 4  ;;  %v299_v18 = vrot.slane %v297_v8, 5  ;;  %v6390_v8 = vld [vmem:[%s6237_s22 + $0x4c] sm:$0xf] }
  0x38   : > { %v313_v19 = vshll.u32 %v182_v4, 16  ;;  %v4803_v21 = vcombine.low %v282_v61, %v292_v13  ;;  %v2091_v24 = vrot.slane %v2090_v17, 4  ;;  %v305_v25 = vrot.slane %v303_v10, 5  ;;  %v183_v61 = vld [vmem:[%s6237_s22 + $0x44] sm:$0x1] }
  0x39   : > { %v2086_v23 = vsel %vm6263_vm4, %v2081_v9, %v2085_v56  ;;  %v300_v27 = vor.u32 %v299_v18, %v296_v14  ;;  %v309_v29 = vrot.slane %v307_v11, 4  ;;  %v2098_v35 = vshrl.u32 %v4990_v12, 16 }
  0x3a   : > { %v315_v31 = vrot.slane %v313_v19, 5  ;;  %5498 = vmatmul.mubr.msk.bf16.gmra.mrb[4].mxu1 %vm631_vm3, %v4803_v21  ;;  %v2096_v37 = vsel %vm6263_vm4, %v2091_v24, %v2095_v6  ;;  %v2101_v36 = vshll.u32 %v4990_v12, 16  ;;  %v2107_v38 = vshll.u32 %v6367_v20, 16 }
  0x3b   : > { %v2111_v39 = vshrl.u32 %v6367_v20, 16  ;;  %v5030_v43 = vcombine.low %v2086_v23, %v2096_v37  ;;  %v301_v44 = vrot.slane %v300_v27, 4  ;;  %v310_v45 = vor.u32 %v309_v29, %v305_v25  ;;  %v6398_v23 = vld [vmem:[%s6237_s22 + $0x50] sm:$0x1]  ;;  %v6402_v27 = vld [vmem:[%s6237_s22 + $0x48] sm:$0xf] }
  0x3c   : > { %v2100_v47 = vrot.slane %v2098_v35, 4  ;;  %v2103_v48 = vrot.slane %v2101_v36, 5  ;;  %v2109_v49 = vrot.slane %v2107_v38, 5  ;;  %v2117_v51 = vshll.u32 %v6372_v34, 16  ;;  %v6405_v36 = vld [vmem:[%s6237_s22 + $0x4c] sm:$0xf] }
  0x3d   : > { %v2113_v50 = vrot.slane %v2111_v39, 4  ;;  %5634 = vmatmul.mubr.msk.bf16.gmra.mrb[4].mxu0 %vm631_vm3, %v5030_v43  ;;  %v306_v52 = vsel %vm6263_vm4, %v301_v44, %v305_v25  ;;  %v311_v53 = vrot.slane %v310_v45, 4  ;;  %v318_v55 = vshrl.u32 %v155_v42, 16 }
  0x3e   : > { %v321_v56 = vshll.u32 %v155_v42, 16  ;;  %v2104_v57 = vor.u32 %v2103_v48, %v2100_v47  ;;  %v2119_v59 = vrot.slane %v2117_v51, 5  ;;  %v327_v0 = vshll.u32 %v156_v26, 16 }
  0x3f   : > { %v2114_v58 = vor.u32 %v2113_v50, %v2109_v49  ;;  %v316_v4 = vsel %vm6263_vm4, %v311_v53, %v315_v31  ;;  %v320_v5 = vrot.slane %v318_v55, 4  ;;  %v331_v7 = vshrl.u32 %v156_v26, 16  ;;  %v184_v26 = vld [vmem:[%s6237_s22 + $0x50] sm:$0x1]  ;;  %v4996_v53 = vld [vmem:[%s6237_s22 + $0x54] sm:$0xf] }
  0x40   : > { %v323_v6 = vrot.slane %v321_v56, 5  ;;  %v4804_v9 = vcombine.low %v306_v52, %v316_v4  ;;  %v2105_v17 = vrot.slane %v2104_v57, 4  ;;  %v329_v11 = vrot.slane %v327_v0, 5  ;;  %v6421_v4 = vld [vmem:[%s6237_s22 + $0x58] sm:$0xf] }
  0x41   : > { %v2115_v10 = vrot.slane %v2114_v58, 4  ;;  %v333_v13 = vrot.slane %v331_v7, 4  ;;  %v337_v14 = vshll.u32 %v183_v61, 16  ;;  %v2122_v18 = vshrl.u32 %v4993_v2, 16 }
  0x42   : > { %v324_v12 = vor.u32 %v323_v6, %v320_v5  ;;  %5501 = vmatprep.mubr.msk.bf16.mxu1 %vm631_vm3, %v4804_v9  ;;  %v2110_v19 = vsel %vm6263_vm4, %v2105_v17, %v2109_v49  ;;  %v2125_v24 = vshll.u32 %v4993_v2, 16  ;;  %v2131_v25 = vshll.u32 %v6390_v8, 16 }
  0x43   : > { %v2120_v21 = vsel %vm6263_vm4, %v2115_v10, %v2119_v59  ;;  %v334_v35 = vor.u32 %v333_v13, %v329_v11  ;;  %v339_v37 = vrot.slane %v337_v14, 5  ;;  %v2124_v38 = vrot.slane %v2122_v18, 4 }
  0x44   : > { %v5031_v29 = vcombine.low %v2110_v19, %v2120_v21  ;;  %v325_v31 = vrot.slane %v324_v12, 4  ;;  %v2127_v39 = vrot.slane %v2125_v24, 5  ;;  %v2133_v42 = vrot.slane %v2131_v25, 5  ;;  %v6427_v12 = vld [vmem:[%s6237_s22 + $0x5c] sm:$0x1] }
  0x45   : > { %v2135_v43 = vshrl.u32 %v6390_v8, 16  ;;  %v335_v45 = vrot.slane %v334_v35, 4  ;;  %v2141_v47 = vshll.u32 %v6398_v23, 16  ;;  %v342_v48 = vshrl.u32 %v6402_v27, 16  ;;  %v6431_v24 = vld [vmem:[%s6237_s22 + $0x54] sm:$0xf] }
  0x46   : > { %5637 = vmatprep.mubr.msk.bf16.mxu0 %vm631_vm3, %v5031_v29  ;;  %v330_v44 = vsel %vm6263_vm4, %v325_v31, %v329_v11  ;;  %v2128_v49 = vor.u32 %v2127_v39, %v2124_v38  ;;  %v345_v51 = vshll.u32 %v6402_v27, 16  ;;  %v351_v52 = vshll.u32 %v6405_v36, 16 }
  0x47   : > { %v2137_v50 = vrot.slane %v2135_v43, 4  ;;  %v340_v55 = vsel %vm6263_vm4, %v335_v45, %v339_v37  ;;  %v2143_v56 = vrot.slane %v2141_v47, 5  ;;  %v344_v57 = vrot.slane %v342_v48, 4  ;;  %v6437_v37 = vld [vmem:[%s6237_s22 + $0x58] sm:$0xf] }
  0x48   : > { %v355_v58 = vshrl.u32 %v6405_v36, 16  ;;  %v4805_v59 = vcombine.low %v330_v44, %v340_v55  ;;  %v2129_v61 = vrot.slane %v2128_v49, 4  ;;  %v347_v2 = vrot.slane %v345_v51, 5 }
  0x49   : > { %v2138_v0 = vor.u32 %v2137_v50, %v2133_v42  ;;  %v353_v5 = vrot.slane %v351_v52, 5  ;;  %v361_v7 = vshll.u32 %v184_v26, 16  ;;  %v2146_v9 = vshrl.u32 %v4996_v53, 16  ;;  %v185_v26 = vld [vmem:[%s6237_s22 + $0x5c] sm:$0x1] }
  0x4a   : > { %v357_v6 = vrot.slane %v355_v58, 4  ;;  %5502 = vmatmul.mubr.msk.bf16.gmra.mrb[8].mxu1 %vm631_vm3, %v4805_v59  ;;  %v2134_v17 = vsel %vm6263_vm4, %v2129_v61, %v2133_v42  ;;  %v348_v11 = vor.u32 %v347_v2, %v344_v57  ;;  %v2149_v13 = vshll.u32 %v4996_v53, 16  ;;  %v4999_v53 = vld [vmem:[%s6237_s22 + $0x60] sm:$0xf]  ;;  %v6451_v59 = vld [vmem:[%s6237_s22 + $0x64] sm:$0xf] }
  0x4b   : > { %v2139_v10 = vrot.slane %v2138_v0, 4  ;;  %v363_v18 = vrot.slane %v361_v7, 5  ;;  %v2148_v19 = vrot.slane %v2146_v9, 4  ;;  %v2155_v21 = vshll.u32 %v6421_v4, 16  ;;  %v6458_v9 = vld [vmem:[%s6237_s22 + $0x68] sm:$0x1] }
  0x4c   : > { %v358_v14 = vor.u32 %v357_v6, %v353_v5  ;;  %v349_v29 = vrot.slane %v348_v11, 4  ;;  %v2151_v31 = vrot.slane %v2149_v13, 5  ;;  %v2159_v35 = vshrl.u32 %v6421_v4, 16 }
  0x4d   : > { %v2144_v25 = vsel %vm6263_vm4, %v2139_v10, %v2143_v56  ;;  %v2157_v42 = vrot.slane %v2155_v21, 5  ;;  %v2165_v43 = vshll.u32 %v6427_v12, 16  ;;  %v366_v48 = vshrl.u32 %v6431_v24, 16 }
  0x4e   : > { %v5032_v38 = vcombine.low %v2134_v17, %v2144_v25  ;;  %v359_v39 = vrot.slane %v358_v14, 4  ;;  %v354_v44 = vsel %vm6263_vm4, %v349_v29, %v353_v5  ;;  %v2152_v45 = vor.u32 %v2151_v31, %v2148_v19  ;;  %v6462_v19 = vld [vmem:[%s6237_s22 + $0x60] sm:$0xf] }
  0x4f   : > { %v2161_v47 = vrot.slane %v2159_v35, 4  ;;  %v2167_v50 = vrot.slane %v2165_v43, 5  ;;  %v369_v51 = vshll.u32 %v6431_v24, 16  ;;  %v375_v52 = vshll.u32 %v6437_v37, 16  ;;  %v6468_v35 = vld [vmem:[%s6237_s22 + $0x64] sm:$0xf] }
  0x50   : > { %5638 = vmatmul.mubr.msk.bf16.gmra.mrb[8].mxu0 %vm631_vm3, %v5032_v38  ;;  %v364_v49 = vsel %vm6263_vm4, %v359_v39, %v363_v18  ;;  %v2153_v56 = vrot.slane %v2152_v45, 4  ;;  %v368_v58 = vrot.slane %v366_v48, 4  ;;  %v379_v2 = vshrl.u32 %v6437_v37, 16 }
  0x51   : > { %v4806_v55 = vcombine.low %v354_v44, %v364_v49  ;;  %v2162_v57 = vor.u32 %v2161_v47, %v2157_v42  ;;  %v371_v61 = vrot.slane %v369_v51, 5  ;;  %v377_v0 = vrot.slane %v375_v52, 5 }
  0x52   : > { %v385_v5 = vshll.u32 %v185_v26, 16  ;;  %v2158_v6 = vsel %vm6263_vm4, %v2153_v56, %v2157_v42  ;;  %v2170_v17 = vshrl.u32 %v4999_v53, 16  ;;  %v2173_v10 = vshll.u32 %v4999_v53, 16 }
  0x53   : > { %5505 = vmatprep.mubr.msk.bf16.mxu1 %vm631_vm3, %v4806_v55  ;;  %v2163_v7 = vrot.slane %v2162_v57, 4  ;;  %v372_v11 = vor.u32 %v371_v61, %v368_v58  ;;  %v381_v13 = vrot.slane %v379_v2, 4  ;;  %v2179_v18 = vshll.u32 %v6451_v59, 16  ;;  %v5059_v58 = vld [vmem:[%s6237_s22 + $0xc] sm:$0xe] }
  0x54   : > { %v387_v14 = vrot.slane %v385_v5, 5  ;;  %v2172_v25 = vrot.slane %v2170_v17, 4  ;;  %v2175_v29 = vrot.slane %v2173_v10, 5  ;;  %v2183_v31 = vshrl.u32 %v6451_v59, 16 }
  0x55   : > { %v2168_v21 = vsel %vm6263_vm4, %v2163_v7, %v2167_v50  ;;  %v373_v39 = vrot.slane %v372_v11, 4  ;;  %v382_v42 = vor.u32 %v381_v13, %v377_v0  ;;  %v2181_v43 = vrot.slane %v2179_v18, 5  ;;  %v186_v50 = vld [vmem:[%s6237_s22 + $0x68] sm:$0x1] }
  0x56   : > { %v5033_v38 = vcombine.low %v2158_v6, %v2168_v21  ;;  %v2176_v44 = vor.u32 %v2175_v29, %v2172_v25  ;;  %v2185_v45 = vrot.slane %v2183_v31, 4  ;;  %v2189_v47 = vshll.u32 %v6458_v9, 16  ;;  %v6496_v29 = vld [vmem:[%s6237_s22 + $0x70] sm:$0xf] }
  0x57   : > { %v390_v26 = vshrl.u32 %v6462_v19, 16  ;;  %v378_v48 = vsel %vm6263_vm4, %v373_v39, %v377_v0  ;;  %v383_v49 = vrot.slane %v382_v42, 4  ;;  %v393_v51 = vshll.u32 %v6462_v19, 16  ;;  %v6483_v0 = vld [vmem:[%s6237_s22 + $0x6c] sm:$0xf] }
  0x58   : > { %5641 = vmatprep.mubr.msk.bf16.mxu0 %vm631_vm3, %v5033_v38  ;;  %v399_v52 = vshll.u32 %v6468_v35, 16  ;;  %v2177_v53 = vrot.slane %v2176_v44, 4  ;;  %v2186_v55 = vor.u32 %v2185_v45, %v2181_v43  ;;  %v2191_v56 = vrot.slane %v2189_v47, 5 }
  0x59   : > { %v392_v57 = vrot.slane %v390_v26, 4  ;;  %v388_v61 = vsel %vm6263_vm4, %v383_v49, %v387_v14  ;;  %v395_v2 = vrot.slane %v393_v51, 5  ;;  %v403_v6 = vshrl.u32 %v6468_v35, 16  ;;  %v187_v26 = vld [vmem:[%s6237_s22 + $0x74] sm:$0x1] }
  0x5a   : > { %v401_v5 = vrot.slane %v399_v52, 5  ;;  %v4807_v7 = vcombine.low %v378_v48, %v388_v61  ;;  %v2182_v17 = vsel %vm6263_vm4, %v2177_v53, %v2181_v43  ;;  %v2187_v10 = vrot.slane %v2186_v55, 4  ;;  %v5060_v48 = vld [vmem:[%s6237_s22 + $0x18] sm:$0xe] }
  0x5b   : > { %v409_v11 = vshll.u32 %v186_v50, 16  ;;  %v396_v14 = vor.u32 %v395_v2, %v392_v57  ;;  %v405_v18 = vrot.slane %v403_v6, 4  ;;  %v5075_v21 = vrot.slane %v5059_v58, 9  ;;  %v6515_v53 = vld [vmem:[%s6237_s22 + $0x78] sm:$0xf] }
  0x5c   : > { %v2747_v25 = vrot.slane %v2745_v62, 4  ;;  %5506 = vmatmul.mubr.msk.bf16.gmra.mrb[12].mxu1 %vm631_vm3, %v4807_v7  ;;  %v2192_v31 = vsel %vm6263_vm4, %v2187_v10, %v2191_v56  ;;  %v414_v39 = vshrl.u32 %v6483_v0, 16  ;;  %v417_v42 = vshll.u32 %v6483_v0, 16  ;;  %v188_v57 = vld [vmem:[%s6237_s22 + $0x80] sm:$0x1] }
  0x5d   : > { %v411_v38 = vrot.slane %v409_v11, 5  ;;  %v5034_v43 = vcombine.low %v2182_v17, %v2192_v31  ;;  %v397_v44 = vrot.slane %v396_v14, 4  ;;  %v406_v45 = vor.u32 %v405_v18, %v401_v5  ;;  %v5061_v10 = vld [vmem:[%s6237_s22 + $0x24] sm:$0xe] }
  0x5e   : > { %v2746_v47 = vsel %vm6489_vm7, %v5075_v21, %v2745_v62  ;;  %v2749_v49 = vsel %vm6489_vm7, %v2747_v25, %v2748_v63  ;;  %v416_v50 = vrot.slane %v414_v39, 4  ;;  %v419_v51 = vrot.slane %v417_v42, 5  ;;  %v6541_v39 = vld [vmem:[%s6237_s22 + $0x84] sm:$0xf] }
  0x5f   : > { %v423_v52 = vshll.u32 %v6496_v29, 16  ;;  %5642 = vmatmul.mubr.msk.bf16.gmra.mrb[12].mxu0 %vm631_vm3, %v5034_v43  ;;  %v402_v15 = vsel %vm6263_vm4, %v397_v44, %v401_v5  ;;  %v407_v62 = vrot.slane %v406_v45, 4  ;;  %v5092_v55 = vcombine.low %v2746_v47, %v2749_v49  ;;  %v6549_v43 = vld [vmem:[%s6237_s22 + $0x88] sm:$0xf] }
  0x60   : > { %v427_v56 = vshrl.u32 %v6496_v29, 16  ;;  %v420_v63 = vor.u32 %v419_v51, %v416_v50  ;;  %v433_v61 = vshll.u32 %v187_v26, 16  ;;  %v5076_v2 = vrot.slane %v5060_v48, 9 }
  0x61   : > { %v425_v58 = vrot.slane %v423_v52, 5  ;;  %v412_v6 = vsel %vm6263_vm4, %v407_v62, %v411_v38  ;;  %5663 = vmatprep.mubr.msk.bf16.mxu0 %vm631_vm3, %v5092_v55  ;;  %v2756_v5 = vsel %vm6489_vm7, %v6306_v30, %v2755_v28  ;;  %v438_v17 = vshrl.u32 %v6515_v53, 16  ;;  %v189_v52 = vld [vmem:[%s6237_s22 + $0x8c] sm:$0x1] }
  0x62   : > { %v429_v7 = vrot.slane %v427_v56, 4  ;;  %v4808_v11 = vcombine.low %v402_v15, %v412_v6  ;;  %v421_v14 = vrot.slane %v420_v63, 4  ;;  %v435_v18 = vrot.slane %v433_v61, 5 }
  0x63   : > { %v2753_v21 = vsel %vm6489_vm7, %v5076_v2, %v2752_v22  ;;  %v440_v38 = vrot.slane %v438_v17, 4  ;;  %v441_v1 = vshll.u32 %v6515_v53, 16  ;;  %v447_v30 = vshll.u32 %v6522_v16, 16  ;;  %v6554_v22 = vld [vmem:[%s7987_s1 + $0x1c] sm:$0xf] }
  0x64   : > { %v430_v25 = vor.u32 %v429_v7, %v425_v58  ;;  %v5093_v31 = vcombine.low %v2753_v21, %v2756_v5  ;;  %5509 = vmatprep.mubr.msk.bf16.mxu1 %vm631_vm3, %v4808_v11  ;;  %v426_v28 = vsel %vm6263_vm4, %v421_v14, %v425_v58  ;;  %v451_v60 = vshrl.u32 %v6522_v16, 16  ;;  %v6573_v5 = vld [vmem:[%s6237_s22 + $0x90] sm:$0xf] }
  0x65   : > { %v457_v42 = vshll.u32 %v188_v57, 16  ;;  %v443_v45 = vrot.slane %v441_v1, 5  ;;  %v5077_v47 = vrot.slane %v5061_v10, 9  ;;  %v2759_v26 = vrot.slane %v6313_v46, 5  ;;  %v5062_v57 = vld [vmem:[%s6237_s22 + $0x30] sm:$0xe] }
  0x66   : > { %v431_v44 = vrot.slane %v430_v25, 4  ;;  %v449_v48 = vrot.slane %v447_v30, 5  ;;  %v453_v49 = vrot.slane %v451_v60, 4  ;;  %v2762_v51 = vrot.slane %v6322_v54, 5  ;;  %v6585_v30 = vld [vmem:[%s6237_s22 + $0x94] sm:$0xf] }
  0x67   : > { %v459_v50 = vrot.slane %v457_v42, 5  ;;  %5664 = vmatmul.mubr.msk.bf16.vlgmr.msra.gmra.mrb[0].mxu0 %vm631_vm3, %v5093_v31  ;;  %v444_v62 = vor.u32 %v443_v45, %v440_v38  ;;  %v2760_v55 = vsel %vm6489_vm7, %v5077_v47, %v2759_v26  ;;  %v2761_v56 = vrot.slane %v2759_v26, 4  ;;  %v190_v60 = vld [vmem:[%s6237_s22 + $0x98] sm:$0x1]  ;;  %v5063_v26 = vld [vmem:[%s6237_s22 + $0x3c] sm:$0xe] }
  0x68   : > { %v436_v15 = vsel %vm6263_vm4, %v431_v44, %v435_v18  ;;  %5696 = vmatpush3.bf16.msra.mxu0 %v6273_v41  ;;  %v454_v46 = vor.u32 %v453_v49, %v449_v48  ;;  %v462_v58 = vshrl.u32 %v6541_v39, 16  ;;  %v465_v54 = vshll.u32 %v6541_v39, 16 }
  0x69   : > { %v4809_v63 = vcombine.low %v426_v28, %v436_v15  ;;  %v445_v61 = vrot.slane %v444_v62, 4  ;;  %v2763_v2 = vsel %vm6489_vm7, %v2761_v56, %v2762_v51  ;;  %v471_v6 = vshll.u32 %v6549_v43, 16  ;;  %6063 = vmatprep.subr.msk.bf16.mxu0 %vm680_vm0, %v6554_v22 }
  0x6a   : > { %v475_v7 = vshrl.u32 %v6549_v43, 16  ;;  %v455_v41 = vrot.slane %v454_v46, 4  ;;  %v5094_v17 = vcombine.low %v2760_v55, %v2763_v2  ;;  %v464_v10 = vrot.slane %v462_v58, 4  ;;  %v6605_v46 = vld [vmem:[%s6237_s22 + $0xa0] sm:$0xf] }
  0x6b   : > { %5510 = vmatmul.mubr.msk.bf16.gmra.mrb[16].mxu1 %vm631_vm3, %v4809_v63  ;;  %v467_v11 = vrot.slane %v465_v54, 5  ;;  %v450_v14 = vsel %vm6263_vm4, %v445_v61, %v449_v48  ;;  %v473_v18 = vrot.slane %v471_v6, 5  ;;  %v481_v25 = vshll.u32 %v189_v52, 16  ;;  %v6594_v52 = vld [vmem:[%s6237_s22 + $0x9c] sm:$0xf] }
  0x6c   : > { %v477_v21 = vrot.slane %v475_v7, 4  ;;  %v460_v31 = vsel %vm6263_vm4, %v455_v41, %v459_v50  ;;  %5667 = vmatprep.mubr.msk.bf16.mxu0 %vm631_vm3, %v5094_v17  ;;  %v5078_v1 = vrot.slane %v5062_v57, 9  ;;  %v2766_v28 = vrot.slane %v6342_v33, 5 }
  0x6d   : > { %v468_v38 = vor.u32 %v467_v11, %v464_v10  ;;  %v4810_v42 = vcombine.low %v450_v14, %v460_v31  ;;  %v483_v45 = vrot.slane %v481_v25, 5  ;;  %v2769_v47 = vrot.slane %v6350_v40, 5  ;;  %v191_v10 = vld [vmem:[%s6237_s22 + $0xa4] sm:$0x1]  ;;  %v5064_v11 = vld [vmem:[%s6237_s22 + $0x48] sm:$0xe] }
  0x6e   : > { %v478_v44 = vor.u32 %v477_v21, %v473_v18  ;;  %v2767_v49 = vsel %vm6489_vm7, %v5078_v1, %v2766_v28  ;;  %v2768_v50 = vrot.slane %v2766_v28, 4  ;;  %v486_v51 = vshrl.u32 %v6573_v5, 16 }
  0x6f   : > { %v469_v48 = vrot.slane %v468_v38, 4  ;;  %5513 = vmatprep.mubr.msk.bf16.mxu1 %vm631_vm3, %v4810_v42  ;;  %v489_v15 = vshll.u32 %v6573_v5, 16  ;;  %v495_v62 = vshll.u32 %v6585_v30, 16  ;;  %v499_v40 = vshrl.u32 %v6585_v30, 16 }
  0x70   : > { %v479_v33 = vrot.slane %v478_v44, 4  ;;  %v2770_v56 = vsel %vm6489_vm7, %v2768_v50, %v2769_v47  ;;  %v488_v57 = vrot.slane %v486_v51, 4  ;;  %v505_v63 = vshll.u32 %v190_v60, 16 }
  0x71   : > { %v474_v55 = vsel %vm6263_vm4, %v469_v48, %v473_v18  ;;  %v5095_v54 = vcombine.low %v2767_v49, %v2770_v56  ;;  %v491_v61 = vrot.slane %v489_v15, 5  ;;  %v497_v2 = vrot.slane %v495_v62, 5  ;;  %v6631_v56 = vld [vmem:[%s6237_s22 + $0xac] sm:$0xf] }
  0x72   : > { %v484_v58 = vsel %vm6263_vm4, %v479_v33, %v483_v45  ;;  %v501_v7 = vrot.slane %v499_v40, 4  ;;  %v507_v41 = vrot.slane %v505_v63, 5  ;;  %v5079_v17 = vrot.slane %v5063_v26, 9  ;;  %v6626_v33 = vld [vmem:[%s6237_s22 + $0xa8] sm:$0xf] }
  0x73   : > { %v4811_v6 = vcombine.low %v474_v55, %v484_v58  ;;  %5668 = vmatmul.mubr.msk.bf16.gmra.mrb[4].mxu0 %vm631_vm3, %v5095_v54  ;;  %v492_v14 = vor.u32 %v491_v61, %v488_v57  ;;  %v2773_v18 = vrot.slane %v6367_v20, 5  ;;  %v2776_v21 = vrot.slane %v6372_v34, 5  ;;  %v192_v61 = vld [vmem:[%s6237_s22 + $0xb0] sm:$0x1] }
  0x74   : > { %v510_v25 = vshrl.u32 %v6594_v52, 16  ;;  %v502_v31 = vor.u32 %v501_v7, %v497_v2  ;;  %v513_v38 = vshll.u32 %v6594_v52, 16  ;;  %v519_v1 = vshll.u32 %v6605_v46, 16 }
  0x75   : > { %5514 = vmatmul.mubr.msk.bf16.gmra.mrb[20].mxu1 %vm631_vm3, %v4811_v6  ;;  %v523_v28 = vshrl.u32 %v6605_v46, 16  ;;  %v493_v60 = vrot.slane %v492_v14, 4  ;;  %v2774_v42 = vsel %vm6489_vm7, %v5079_v17, %v2773_v18  ;;  %v2775_v20 = vrot.slane %v2773_v18, 4  ;;  %v6646_v14 = vld [vmem:[%s6237_s22 + $0xb4] sm:$0xf] }
  0x76   : > { %v512_v44 = vrot.slane %v510_v25, 4  ;;  %v503_v34 = vrot.slane %v502_v31, 4  ;;  %v515_v45 = vrot.slane %v513_v38, 5  ;;  %v521_v47 = vrot.slane %v519_v1, 5 }
  0x77   : > { %v525_v26 = vrot.slane %v523_v28, 4  ;;  %v498_v48 = vsel %vm6263_vm4, %v493_v60, %v497_v2  ;;  %v2777_v49 = vsel %vm6489_vm7, %v2775_v20, %v2776_v21  ;;  %v529_v50 = vshll.u32 %v191_v10, 16  ;;  %v5065_v2 = vld [vmem:[%s6237_s22 + $0x54] sm:$0xe] }
  0x78   : > { %v5080_v51 = vrot.slane %v5064_v11, 9  ;;  %v508_v15 = vsel %vm6263_vm4, %v503_v34, %v507_v41  ;;  %v5096_v62 = vcombine.low %v2774_v42, %v2777_v49  ;;  %v516_v40 = vor.u32 %v515_v45, %v512_v44  ;;  %v6655_v42 = vld [vmem:[%s6237_s22 + $0xb8] sm:$0xf]  ;;  %v193_v49 = vld [vmem:[%s6237_s22 + $0xbc] sm:$0x1] }
  0x79   : > { %v526_v55 = vor.u32 %v525_v26, %v521_v47  ;;  %v4812_v57 = vcombine.low %v498_v48, %v508_v15  ;;  %v531_v63 = vrot.slane %v529_v50, 5  ;;  %v2780_v58 = vrot.slane %v6390_v8, 5 }
  0x7a   : > { %v2783_v54 = vrot.slane %v6398_v23, 5  ;;  %5671 = vmatprep.mubr.msk.bf16.mxu0 %vm631_vm3, %v5096_v62  ;;  %v517_v6 = vrot.slane %v516_v40, 4  ;;  %v534_v41 = vshrl.u32 %v6626_v33, 16  ;;  %v537_v17 = vshll.u32 %v6626_v33, 16 }
  0x7b   : > { %v527_v7 = vrot.slane %v526_v55, 4  ;;  %5517 = vmatprep.mubr.msk.bf16.mxu1 %vm631_vm3, %v4812_v57  ;;  %v2781_v10 = vsel %vm6489_vm7, %v5080_v51, %v2780_v58  ;;  %v2782_v11 = vrot.slane %v2780_v58, 4  ;;  %v543_v8 = vshll.u32 %v6631_v56, 16  ;;  %v5066_v55 = vld [vmem:[%s6237_s22 + $0x60] sm:$0xe] }
  0x7c   : > { %v547_v23 = vshrl.u32 %v6631_v56, 16  ;;  %v522_v18 = vsel %vm6263_vm4, %v517_v6, %v521_v47  ;;  %v536_v25 = vrot.slane %v534_v41, 4  ;;  %v539_v31 = vrot.slane %v537_v17, 5  ;;  %v5067_v6 = vld [vmem:[%s6237_s22 + $0x6c] sm:$0xe] }
  0x7d   : > { %v532_v21 = vsel %vm6263_vm4, %v527_v7, %v531_v63  ;;  %v2784_v1 = vsel %vm6489_vm7, %v2782_v11, %v2783_v54  ;;  %v545_v28 = vrot.slane %v543_v8, 5  ;;  %v553_v34 = vshll.u32 %v192_v61, 16  ;;  %v5003_v11 = vld [vmem:[%s6237_s22 + $0x70] sm:$0xf]  ;;  %v5004_v8 = vld [vmem:[%s6237_s22 + $0x74] sm:$0x1] }
  0x7e   : > { %v4813_v38 = vcombine.low %v522_v18, %v532_v21  ;;  %v549_v60 = vrot.slane %v547_v23, 4  ;;  %v5097_v20 = vcombine.low %v2781_v10, %v2784_v1  ;;  %v540_v44 = vor.u32 %v539_v31, %v536_v25 }
  0x7f   : > { %v5081_v45 = vrot.slane %v5065_v2, 9  ;;  %v2787_v26 = vrot.slane %v6421_v4, 5  ;;  %v2790_v48 = vrot.slane %v6427_v12, 5  ;;  %v558_v50 = vshrl.u32 %v6646_v14, 16 }
  0x80   : > { %5518 = vmatmul.mubr.msk.bf16.gmra.mrb[24].mxu1 %vm631_vm3, %v4813_v38  ;;  %v550_v47 = vor.u32 %v549_v60, %v545_v28  ;;  %5672 = vmatmul.mubr.msk.bf16.gmra.mrb[8].mxu0 %vm631_vm3, %v5097_v20  ;;  %v541_v51 = vrot.slane %v540_v44, 4  ;;  %v555_v15 = vrot.slane %v553_v34, 5  ;;  %v561_v62 = vshll.u32 %v6646_v14, 16 }
  0x81   : > { %v567_v40 = vshll.u32 %v6655_v42, 16  ;;  %v2788_v4 = vsel %vm6489_vm7, %v5081_v45, %v2787_v26  ;;  %v2789_v12 = vrot.slane %v2787_v26, 4  ;;  %v560_v63 = vrot.slane %v558_v50, 4 }
  0x82   : > { %v551_v57 = vrot.slane %v550_v47, 4  ;;  %v546_v58 = vsel %vm6263_vm4, %v541_v51, %v545_v28  ;;  %v563_v54 = vrot.slane %v561_v62, 5  ;;  %v571_v2 = vshrl.u32 %v6655_v42, 16  ;;  %v5068_v47 = vld [vmem:[%s6237_s22 + $0x78] sm:$0xe] }
  0x83   : > { %v569_v61 = vrot.slane %v567_v40, 5  ;;  %v2791_v41 = vsel %vm6489_vm7, %v2789_v12, %v2790_v48  ;;  %v577_v17 = vshll.u32 %v193_v49, 16  ;;  %v5082_v10 = vrot.slane %v5066_v55, 9  ;;  %v6122_v51 = vld [vmem:[%s6237_s22] sm:$0xf] }
  0x84   : > { %v556_v7 = vsel %vm6263_vm4, %v551_v57, %v555_v15  ;;  %v5098_v18 = vcombine.low %v2788_v4, %v2791_v41  ;;  %v564_v21 = vor.u32 %v563_v54, %v560_v63  ;;  %v573_v25 = vrot.slane %v571_v2, 4  ;;  %v6693_v15 = vld [vmem:[%s6237_s22 + $0x4] sm:$0xf]  ;;  %v6697_v40 = vld [vmem:[%s6237_s22 + $0x7c] sm:$0xf] }
  0x85   : > { %v4814_v23 = vcombine.low %v546_v58, %v556_v7  ;;  %v579_v31 = vrot.slane %v577_v17, 5  ;;  %v2794_v38 = vrot.slane %v6451_v59, 5  ;;  %v2797_v1 = vrot.slane %v6458_v9, 5  ;;  %v6700_v55 = vld [vmem:[%s6237_s22 + $0x80] sm:$0x1] }
  0x86   : > { %v5083_v28 = vrot.slane %v5067_v6, 9  ;;  %5675 = vmatprep.mubr.msk.bf16.mxu0 %vm631_vm3, %v5098_v18  ;;  %v565_v60 = vrot.slane %v564_v21, 4  ;;  %v574_v20 = vor.u32 %v573_v25, %v569_v61  ;;  %v2801_v44 = vrot.slane %v5003_v11, 5  ;;  %v5009_v57 = vld [vmem:[%s6237_s22 + $0x88] sm:$0xf] }
  0x87   : > { %5521 = vmatprep.mubr.msk.bf16.mxu1 %vm631_vm3, %v4814_v23  ;;  %v2804_v34 = vrot.slane %v5004_v8, 5  ;;  %v2795_v45 = vsel %vm6489_vm7, %v5082_v10, %v2794_v38  ;;  %v2796_v59 = vrot.slane %v2794_v38, 4  ;;  %v4832_v62 = vcombine.low %v6122_v51, %v6693_v15  ;;  %v5010_v54 = vld [vmem:[%s6237_s22 + $0x8c] sm:$0x1]  ;;  %v5012_v17 = vld [vmem:[%s6237_s22 + $0x94] sm:$0xf] }
  0x88   : > { %v570_v9 = vsel %vm6263_vm4, %v565_v60, %v569_v61  ;;  %v575_v26 = vrot.slane %v574_v20, 4  ;;  %v2802_v48 = vsel %vm6489_vm7, %v5083_v28, %v2801_v44  ;;  %v2803_v49 = vrot.slane %v2801_v44, 4  ;;  %v5069_v61 = vld [vmem:[%s6237_s22 + $0x84] sm:$0xe]  ;;  %v5070_v23 = vld [vmem:[%s6237_s22 + $0x90] sm:$0xe] }
  0x89   : > { %v2798_v50 = vsel %vm6489_vm7, %v2796_v59, %v2797_v1  ;;  %v5084_v58 = vrot.slane %v5068_v47, 9  ;;  %v2808_v7 = vrot.slane %v6697_v40, 5  ;;  %v2811_v41 = vrot.slane %v6700_v55, 5  ;;  %v5013_v25 = vld [vmem:[%s6237_s22 + $0x98] sm:$0x1] }
  0x8a   : > { %v580_v4 = vsel %vm6263_vm4, %v575_v26, %v579_v31  ;;  %v5099_v12 = vcombine.low %v2795_v45, %v2798_v50  ;;  %v2805_v63 = vsel %vm6489_vm7, %v2803_v49, %v2804_v34  ;;  %v5085_v10 = vrot.slane %v5069_v61, 9  ;;  %v5015_v31 = vld [vmem:[%s6237_s22 + $0xa0] sm:$0xf]  ;;  %v5016_v60 = vld [vmem:[%s6237_s22 + $0xa4] sm:$0x1] }
  0x8b   : > { %v4815_v2 = vcombine.low %v570_v9, %v580_v4  ;;  %v5100_v6 = vcombine.low %v2802_v48, %v2805_v63  ;;  %v2815_v11 = vrot.slane %v5009_v57, 5  ;;  %v2818_v8 = vrot.slane %v5010_v54, 5  ;;  %v5071_v20 = vld [vmem:[%s6237_s22 + $0x9c] sm:$0xe]  ;;  %v6124_v44 = vld [vmem:[%s6237_s22 + $0xc] sm:$0xf] }
  0x8c   : > { %5676 = vmatmul.mubr.msk.bf16.gmra.mrb[12].mxu0 %vm631_vm3, %v5099_v12  ;;  %v2809_v18 = vsel %vm6489_vm7, %v5084_v58, %v2808_v7  ;;  %v2810_v21 = vrot.slane %v2808_v7, 4  ;;  %v2822_v28 = vrot.slane %v5012_v17, 5  ;;  %v6727_v34 = vld [vmem:[%s6237_s22 + $0x10] sm:$0xf]  ;;  %v6126_v47 = vld [vmem:[%s6237_s22 + $0x18] sm:$0xf] }
  0x8d   : > { %5522 = vmatmul.mubr.msk.bf16.gmra.mrb[28].mxu1 %vm631_vm3, %v4815_v2  ;;  %5679 = vmatprep.mubr.msk.bf16.mxu0 %vm631_vm3, %v5100_v6  ;;  %v2816_v38 = vsel %vm6489_vm7, %v5085_v10, %v2815_v11  ;;  %v2817_v1 = vrot.slane %v2815_v11, 4  ;;  %v4833_v45 = vcombine.low %v6124_v44, %v6727_v34  ;;  %v6734_v9 = vld [vmem:[%s6237_s22 + $0x1c] sm:$0xf]  ;;  %v5086_v48 = vrot.slane %v5070_v23, 9  ;;  %v5018_v57 = vld [vmem:[%s6237_s22 + $0xac] sm:$0xf] }
  0x8e   : > { %5527 = vmatprep.mubr.msk.bf16.mxu1 %vm631_vm3, %v4832_v62  ;;  %v2812_v59 = vsel %vm6489_vm7, %v2810_v21, %v2811_v41  ;;  %v4834_v26 = vcombine.low %v6126_v47, %v6734_v9  ;;  %v2824_v51 = vrot.slane %v2822_v28, 4  ;;  %v2825_v62 = vrot.slane %v5013_v25, 5  ;;  %v6128_v54 = vld [vmem:[%s7987_s1 + $0x8] sm:$0xf]  ;;  %v5021_v2 = vld [vmem:[%s6237_s22 + $0xb8] sm:$0xf] }
  0x8f   : > { %v5101_v49 = vcombine.low %v2809_v18, %v2812_v59  ;;  %v2819_v50 = vsel %vm6489_vm7, %v2817_v1, %v2818_v8  ;;  %v5087_v12 = vrot.slane %v5071_v20, 9  ;;  %v2829_v63 = vrot.slane %v5015_v31, 5  ;;  %v6749_v7 = vld [vmem:[%s7987_s1 + $0xc] sm:$0xf]  ;;  %v5019_v10 = vld [vmem:[%s6237_s22 + $0xb0] sm:$0x1] }
  0x90   : > { %v5102_v4 = vcombine.low %v2816_v38, %v2819_v50  ;;  %v2832_v58 = vrot.slane %v5016_v60, 5  ;;  %v1399_v61 = vsel %vm680_vm0, %v6128_v54, 0  ;;  %v2823_v41 = vsel %vm6489_vm7, %v5086_v48, %v2822_v28  ;;  %v5072_v11 = vld [vmem:[%s6237_s22 + $0xa8] sm:$0xe]  ;;  %v5022_v25 = vld [vmem:[%s6237_s22 + $0xbc] sm:$0x1] }
  0x91   : > { %v2831_v6 = vrot.slane %v2829_v63, 4  ;;  %v2826_v17 = vsel %vm6489_vm7, %v2824_v51, %v2825_v62  ;;  %v2836_v8 = vrot.slane %v5018_v57, 5  ;;  %v2830_v23 = vsel %vm6489_vm7, %v5087_v12, %v2829_v63  ;;  %v5073_v31 = vld [vmem:[%s6237_s22 + $0xb4] sm:$0xe]  ;;  %v6129_v38 = vld [vmem:[%s6237_s22 + $0x24] sm:$0xf] }
  0x92   : > { %v2843_v21 = vrot.slane %v5021_v2, 5  ;;  %v6770_v1 = vld [vmem:[%s6237_s22 + $0x28] sm:$0xf]  ;;  %v5103_v60 = vcombine.low %v2823_v41, %v2826_v17  ;;  %v5088_v44 = vrot.slane %v5072_v11, 9  ;;  %v2839_v59 = vrot.slane %v5019_v10, 5 }
  0x93   : > { %v2833_v18 = vsel %vm6489_vm7, %v2831_v6, %v2832_v58  ;;  %v4835_v28 = vcombine.low %v6129_v38, %v6770_v1  ;;  %v6131_v47 = vld [vmem:[%s6237_s22 + $0x30] sm:$0xf]  ;;  %v2846_v51 = vrot.slane %v5022_v25, 5  ;;  %v5024_v62 = vld [vmem:[%s6237_s22 + $0xc4] sm:$0xf]  ;;  %v2231_v25 = vshrl.u32 %v6697_v40, 16 }
  0x94   : > { %5680 = vmatmul.mubr.msk.bf16.gmra.mrb[16].mxu0 %vm631_vm3, %v5101_v49  ;;  %v5104_v20 = vcombine.low %v2830_v23, %v2833_v18  ;;  %v5089_v49 = vrot.slane %v5073_v31, 9  ;;  %v2845_v50 = vrot.slane %v2843_v21, 4  ;;  %v2837_v57 = vsel %vm6489_vm7, %v5088_v44, %v2836_v8  ;;  %v5074_v12 = vld [vmem:[%s6237_s22 + $0xc0] sm:$0xe]  ;;  %v6133_v41 = vld [vmem:[%s6237_s22 + $0x3c] sm:$0xf] }
  0x95   : > { %5528 = vmatmul.mubr.msk.bf16.vlgmr.msra.gmra.mrb[0].mxu1 %vm631_vm3, %v4833_v45  ;;  %5683 = vmatprep.mubr.msk.bf16.mxu0 %vm631_vm3, %v5102_v4  ;;  %v2838_v45 = vrot.slane %v2836_v8, 4  ;;  %v2850_v63 = vrot.slane %v5024_v62, 5  ;;  %v5090_v6 = vrot.slane %v5074_v12, 9  ;;  %v6795_v17 = vld [vmem:[%s6237_s22 + $0x40] sm:$0xf]  ;;  %v4838_v18 = vcombine.low %v6402_v27, %v6405_v36  ;;  %v6085_v62 = vld [vmem:[%s6237_s22 + $0x24] sm:$0xff]  }
  0x96   : > { %5560 = vmatpush3.bf16.msra.mxu1 %v1399_v61  ;;  %5531 = vmatprep.mubr.msk.bf16.mxu1 %vm631_vm3, %v4834_v26  ;;  %v6775_v26 = vld [vmem:[%s6237_s22 + $0x34] sm:$0xf]  ;;  %v2844_v58 = vsel %vm6489_vm7, %v5089_v49, %v2843_v21  ;;  %v2847_v54 = vsel %vm6489_vm7, %v2845_v50, %v2846_v51  ;;  %v5025_v61 = vld [vmem:[%s6237_s22 + $0xc8] sm:$0x1]  ;;  %v4837_v10 = vcombine.low %v6133_v41, %v6795_v17  ;;  %v2227_v21 = vshll.u32 %v6697_v40, 16 }
  0x97   : > { %6058 = vmatprep.subr.msk.bf16.mxu1 %vm680_vm0, %v6749_v7  ;;  %v4836_v48 = vcombine.low %v6131_v47, %v6775_v26  ;;  %v2840_v4 = vsel %vm6489_vm7, %v2838_v45, %v2839_v59  ;;  %v5106_v11 = vcombine.low %v2844_v58, %v2847_v54  ;;  %v2852_v8 = vrot.slane %v2850_v63, 4  ;;  %v1137_v45 = vld [vmem:[%s6237_s22] sm:$0xe]  ;;  %v1138_v59 = vld [vmem:[%s6237_s22 + $0xc] sm:$0xe] }
  0x98   : > { %v5105_v2 = vcombine.low %v2837_v57, %v2840_v4  ;;  %v2853_v23 = vrot.slane %v5025_v61, 5  ;;  %v2851_v31 = vsel %vm6489_vm7, %v5090_v6, %v2850_v63  ;;  %v6810_v27 = vrot.slane %v2227_v21, 5  ;;  %v1141_v41 = vld [vmem:[%s6237_s22 + $0x30] sm:$0xe] }
  0x99   : > { %v2233_v36 = vrot.slane %v2231_v25, 4  ;;  %v4840_v44 = vcombine.low %v6462_v19, %v6468_v35  ;;  %v2237_v47 = vshll.u32 %v6700_v55, 16  ;;  %v4864_v19 = vrot.slane %v1137_v45, 9 }
  0x9a   : > { %v2854_v38 = vsel %vm6489_vm7, %v2852_v8, %v2853_v23  ;;  %8007 = vst [vmem:[#allocation3_spill] sm:$0xff] %v6810_v27  ;;  %v4865_v35 = vrot.slane %v1138_v59, 9  ;;  %v1204_v4 = vrot.slane %v6734_v9, 5  ;;  %v1211_v12 = vrot.slane %v6770_v1, 5  ;;  %v1142_v8 = vld [vmem:[%s6237_s22 + $0x3c] sm:$0xe] }
  0x9b   : > { %v5107_v40 = vcombine.low %v2851_v31, %v2854_v38  ;;  %v2234_v49 = vor.u32 %v2233_v36, %v6810_v27  ;;  %v6830_v51 = vrot.slane %v2237_v47, 5  ;;  %v4841_v58 = vcombine.low %v6483_v0, %v6496_v29  ;;  %v1143_v31 = vld [vmem:[%s6237_s22 + $0x48] sm:$0xe]  ;;  %v6139_v59 = vld [vmem:[%s6237_s22 + $0x38] sm:$0x1] }
  0x9c   : > { %5684 = vmatmul.mubr.msk.bf16.gmra.mrb[20].mxu0 %vm631_vm3, %v5103_v60  ;;  %v4839_v60 = vcombine.low %v6431_v24, %v6437_v37  ;;  %v6136_v24 = vld [vmem:[%s6237_s22 + $0x14] sm:$0x1]  ;;  %v4039_v54 = vsel %vm680_vm0, %v6554_v22, 0  ;;  %v4842_v61 = vcombine.low %v6515_v53, %v6522_v16  ;;  %v4843_v6 = vcombine.low %v6541_v39, %v6549_v43  ;;  %v6137_v16 = vld [vmem:[%s6237_s22 + $0x20] sm:$0x1] }
  0x9d   : > { %5532 = vmatmul.mubr.msk.bf16.gmra.mrb[4].mxu1 %vm631_vm3, %v4835_v28  ;;  %5687 = vmatprep.mubr.msk.bf16.mxu0 %vm631_vm3, %v5104_v20  ;;  %v1197_v28 = vrot.slane %v6727_v34, 5  ;;  %v6083_v20 = vld [vmem:[%s6237_s22 + $0x18] sm:$0xff]   ;;  %v6135_v34 = vld [vmem:[%s6237_s22 + $0x8] sm:$0x1]  ;;  %v1200_v37 = vrot.slane %v6136_v24, 5  ;;  %8008 = vst [vmem:[#allocation4_spill] sm:$0xff] %v6830_v51  ;;  %v4844_v9 = vcombine.low %v6573_v5, %v6585_v30 }
  0x9e   : > { %5535 = vmatprep.mubr.msk.bf16.mxu1 %vm631_vm3, %v4836_v48  ;;  %v1190_v48 = vrot.slane %v6693_v15, 5  ;;  %v1193_v50 = vrot.slane %v6135_v34, 5  ;;  %v1139_v15 = vld [vmem:[%s6237_s22 + $0x18] sm:$0xe]  ;;  %v6835_v63 = vrot.slane %v2234_v49, 4  ;;  %v1207_v22 = vrot.slane %v6137_v16, 5 }
  0x9f   : > { %v1199_v55 = vrot.slane %v1197_v28, 4  ;;  %v4866_v1 = vrot.slane %v1139_v15, 9  ;;  %v6857_v29 = vsel %vm6489_vm7, %v4865_v35, %v1197_v28  ;;  %v1213_v25 = vrot.slane %v1211_v12, 4  ;;  %v5189_v24 = vld [vmem:[%s6237_s22 + $0x18] sm:$0xf] }
  0xa0   : > { %v1192_v57 = vrot.slane %v1190_v48, 4  ;;  %8009 = vst [vmem:[#allocation5_spill] sm:$0xff] %v6835_v63  ;;  %v6853_v0 = vsel %vm6489_vm7, %v4864_v19, %v1190_v48  ;;  %v1221_v47 = vrot.slane %v6139_v59, 5  ;;  %v6894_v49 = vsel %vm680_vm0, %v6749_v7, 0  ;;  %v5190_v7 = vld [vmem:[%s6237_s22 + $0x1c] sm:$0xf] }
  0xa1   : > { %v6861_v53 = vsel %vm6489_vm7, %v1199_v55, %v1200_v37  ;;  %v6898_v34 = vsel %vm6489_vm7, %v4866_v1, %v1204_v4  ;;  %v6089_v37 = vld [vmem:[%s6237_s22 + $0x3c] sm:$0xff]   ;;  %v4869_v35 = vrot.slane %v1142_v8, 9  ;;  %v6140_v55 = vld [vmem:[%s6237_s22 + $0x44] sm:$0x1]  ;;  %v3560_v8 = vshll.u32 %v5189_v24, 16 }
  0xa2   : > { %v6872_v23 = vsel %vm6489_vm7, %v1192_v57, %v1193_v50  ;;  %v1144_v50 = vld [vmem:[%s6237_s22 + $0x54] sm:$0xe]  ;;  %v1228_v15 = vrot.slane %v6140_v55, 5  ;;  %v5193_v39 = vld [vmem:[%s6237_s22 + $0x28] sm:$0xf] }
  0xa3   : > { %v6147_v5 = vld [vmem:[%s6237_s22 + $0x70] sm:$0xf] }
  0xa4   : > { %5688 = vmatmul.mubr.msk.bf16.gmra.mrb[24].mxu0 %vm631_vm3, %v5105_v2  ;;  %v1140_v2 = vld [vmem:[%s6237_s22 + $0x24] sm:$0xe]  ;;  %v1253_v30 = vrot.slane %v6147_v5, 5 }
  0xa5   : > { %5536 = vmatmul.mubr.msk.bf16.gmra.mrb[8].mxu1 %vm631_vm3, %v4837_v10  ;;  %5691 = vmatprep.mubr.msk.bf16.mxu0 %vm631_vm3, %v5106_v11  ;;  %v1218_v10 = vrot.slane %v6775_v26, 5  ;;  %v6087_v11 = vld [vmem:[%s6237_s22 + $0x30] sm:$0xff]   ;;  %v6868_v26 = vld [vmem:[%s7987_s1 + $0x20] sm:$0xf]  ;;  %v4867_v21 = vrot.slane %v1140_v2, 9 }
  0xa6   : > { %5539 = vmatprep.mubr.msk.bf16.mxu1 %vm631_vm3, %v4838_v18  ;;  %v1206_v18 = vrot.slane %v1204_v4, 4  ;;  %v1255_v48 = vrot.slane %v1253_v30, 4 }
  0xa7   : > { %v1220_v45 = vrot.slane %v1218_v10, 4  ;;  %v6905_v19 = vsel %vm6489_vm7, %v4867_v21, %v1211_v12  ;;  %v3570_v21 = vshrl.u32 %v5190_v7, 16 }
  0xa8   : > { %v6914_v4 = vsel %vm6489_vm7, %v1206_v18, %v1207_v22  ;;  %v3557_v22 = vshrl.u32 %v5189_v24, 16  ;;  %v3566_v18 = vshll.u32 %v5190_v7, 16  ;;  %v5192_v24 = vld [vmem:[%s6237_s22 + $0x24] sm:$0xf] }
  0xa9   : > { %v6927_v1 = vsel %vm6489_vm7, %v1220_v45, %v1221_v47 }
  0xaa   : > { %v3559_v43 = vrot.slane %v3557_v22, 4  ;;  %v6969_v7 = vrot.slane %v3566_v18, 5  ;;  %v3584_v22 = vshll.u32 %v5192_v24, 16  ;;  %v3594_v18 = vshrl.u32 %v5193_v39, 16 }
  0xac   : > { %5692 = vmatmul.mubr.msk.bf16.gmra.mrb[28].mxu0 %vm631_vm3, %v5107_v40  ;;  %v6138_v40 = vld [vmem:[%s6237_s22 + $0x2c] sm:$0x1]  ;;  %v3586_v27 = vrot.slane %v3584_v22, 5 }
  0xad   : > { %5540 = vmatmul.mubr.msk.bf16.gmra.mrb[12].mxu1 %vm631_vm3, %v4839_v60  ;;  %5697 = vmatprep.mubr.msk.bf16.mxu0 %vm631_vm3, %v6083_v20  ;;  %v1214_v28 = vrot.slane %v6138_v40, 5  ;;  %v1225_v60 = vrot.slane %v6795_v17, 5  ;;  %v6143_v40 = vld [vmem:[%s6237_s22 + $0x50] sm:$0x1]  ;;  %v6148_v17 = vld [vmem:[%s6237_s22 + $0x74] sm:$0x1] }
  0xae   : > { %5543 = vmatprep.mubr.msk.bf16.mxu1 %vm631_vm3, %v4840_v44  ;;  %v4868_v44 = vrot.slane %v1141_v41, 9  ;;  %v4871_v41 = vrot.slane %v1144_v50, 9  ;;  %v1145_v50 = vld [vmem:[%s6237_s22 + $0x60] sm:$0xe]  ;;  %v5194_v20 = vld [vmem:[%s6237_s22 + $0x2c] sm:$0x1] }
  0xaf   : > { %v1227_v12 = vrot.slane %v1225_v60, 4  ;;  %v6940_v45 = vsel %vm6489_vm7, %v4869_v35, %v1225_v60  ;;  %v6144_v35 = vld [vmem:[%s6237_s22 + $0x5c] sm:$0x1] }
  0xb0   : > { %v6923_v2 = vsel %vm6489_vm7, %v4868_v44, %v1218_v10  ;;  %v1242_v55 = vrot.slane %v6144_v35, 5  ;;  %v1146_v35 = vld [vmem:[%s6237_s22 + $0x6c] sm:$0xe] }
  0xb1   : > { %v6944_v59 = vsel %vm6489_vm7, %v1227_v12, %v1228_v15  ;;  %v6145_v15 = vld [vmem:[%s6237_s22 + $0x64] sm:$0xf]  ;;  %v3572_v12 = vrot.slane %v3570_v21, 4  ;;  %v4873_v5 = vrot.slane %v1146_v35, 9 }
  0xb2   : > { %v6095_v21 = vld [vmem:[%s6237_s22 + $0x60] sm:$0xff]  }
  0xb4   : > { %5698 = vmatmul.mubr.msk.bf16.vlgmr.msra.gmra.mrb[0].mxu0 %vm631_vm3, %v6085_v62  ;;  %v6141_v62 = vld [vmem:[%s6237_s22 + $0x4c] sm:$0xf] }
  0xb5   : > { %5544 = vmatmul.mubr.msk.bf16.gmra.mrb[16].mxu1 %vm631_vm3, %v4841_v58  ;;  %5730 = vmatpush3.bf16.msra.mxu0 %v4039_v54  ;;  %v1232_v57 = vrot.slane %v6141_v62, 5  ;;  %v6918_v58 = vsel %vm6489_vm7, %v1213_v25, %v1214_v28  ;;  %v4870_v54 = vrot.slane %v1143_v31, 9  ;;  %v1235_v28 = vrot.slane %v6143_v40, 5 }
  0xb6   : > { %5547 = vmatprep.mubr.msk.bf16.mxu1 %vm631_vm3, %v4842_v61  ;;  %5701 = vmatprep.mubr.msk.bf16.mxu0 %vm631_vm3, %v6087_v11  ;;  %v6091_v61 = vld [vmem:[%s6237_s22 + $0x48] sm:$0xff]   ;;  %v6142_v11 = vld [vmem:[%s6237_s22 + $0x58] sm:$0xf]  ;;  %v1246_v62 = vrot.slane %v6145_v15, 5  ;;  %v5196_v15 = vld [vmem:[%s6237_s22 + $0x34] sm:$0xf] }
  0xb7   : > { %6064 = vmatprep.subr.msk.bf16.mxu0 %vm680_vm0, %v6868_v26  ;;  %v1239_v16 = vrot.slane %v6142_v11, 5  ;;  %v1234_v31 = vrot.slane %v1232_v57, 4  ;;  %v6948_v47 = vsel %vm6489_vm7, %v4870_v54, %v1232_v57  ;;  %v5191_v57 = vld [vmem:[%s6237_s22 + $0x20] sm:$0x1]  ;;  %v5195_v54 = vld [vmem:[%s6237_s22 + $0x30] sm:$0xf] }
  0xb8   : > { %v4872_v11 = vrot.slane %v1145_v50, 9  ;;  %v3608_v50 = vshll.u32 %v5195_v54, 16  ;;  %v3576_v25 = vshll.u32 %v5191_v57, 16  ;;  %v3614_v36 = vshll.u32 %v5196_v15, 16 }
  0xb9   : > { %v6959_v60 = vsel %vm6489_vm7, %v4871_v41, %v1239_v16  ;;  %v6975_v41 = vsel %vm6489_vm7, %v1234_v31, %v1235_v28  ;;  %v1248_v31 = vrot.slane %v1246_v62, 4  ;;  %v3605_v28 = vshrl.u32 %v5195_v54, 16 }
  0xba   : > { %v7017_v35 = vrot.slane %v3614_v36, 5 }
  0xbc   : > { %5702 = vmatmul.mubr.msk.bf16.gmra.mrb[4].mxu0 %vm631_vm3, %v6089_v37  ;;  %v1241_v37 = vrot.slane %v1239_v16, 4  ;;  %v6146_v16 = vld [vmem:[%s6237_s22 + $0x68] sm:$0x1] }
  0xbd   : > { %5548 = vmatmul.mubr.msk.bf16.gmra.mrb[20].mxu1 %vm631_vm3, %v4843_v6  ;;  %5705 = vmatprep.mubr.msk.bf16.mxu0 %vm631_vm3, %v6091_v61  ;;  %v3562_v6 = vrot.slane %v3560_v8, 5  ;;  %v6093_v61 = vld [vmem:[%s6237_s22 + $0x54] sm:$0xff]   ;;  %v1249_v40 = vrot.slane %v6146_v16, 5  ;;  %v3590_v8 = vshll.u32 %v5193_v39, 16  ;;  %v3573_v16 = vor.u32 %v3572_v12, %v6969_v7 }
  0xbe   : > { %5551 = vmatprep.mubr.msk.bf16.mxu1 %vm631_vm3, %v4844_v9  ;;  %v3581_v9 = vshrl.u32 %v5192_v24, 16  ;;  %v6984_v44 = vsel %vm6489_vm7, %v1241_v37, %v1242_v55  ;;  %v1256_v24 = vrot.slane %v6148_v17, 5  ;;  %v3618_v39 = vshrl.u32 %v5196_v15, 16 }
  0xbf   : > { %v3563_v10 = vor.u32 %v3562_v6, %v3559_v43  ;;  %v6990_v37 = vrot.slane %v3590_v8, 5  ;;  %v3596_v55 = vrot.slane %v3594_v18, 4  ;;  %v8010_v43 = vcombine.low %v6594_v52, %v6605_v46  ;;  %v6149_v8 = vld [vmem:[%s6237_s22 + $0x7c] sm:$0xf]  ;;  %v7026_v18 = vld [vmem:[%s6237_s22 + $0x38] sm:$0x1] }
  0xc0   : > { %v3583_v38 = vrot.slane %v3581_v9, 4  ;;  %v6999_v17 = vsel %vm6489_vm7, %v4872_v11, %v1246_v62  ;;  %v7003_v57 = vsel %vm6489_vm7, %v1248_v31, %v1249_v40  ;;  %v3607_v6 = vrot.slane %v3605_v28, 4  ;;  %8012 = vst [vmem:[#allocation6_spill] sm:$0xff] %v7026_v18 }
  0xc1   : > { %v3610_v12 = vrot.slane %v3608_v50, 5  ;;  %v8011_v52 = vcombine.low %v6626_v33, %v6631_v56  ;;  %v3564_v46 = vrot.slane %v3563_v10, 4  ;;  %v3574_v54 = vrot.slane %v3573_v16, 4  ;;  %v6097_v33 = vld [vmem:[%s6237_s22 + $0x6c] sm:$0xff]   ;;  %v1148_v16 = vld [vmem:[%s6237_s22 + $0x84] sm:$0xe] }
  0xc2   : > { %v3600_v62 = vshll.u32 %v5194_v20, 16  ;;  %v7011_v11 = vsel %vm6489_vm7, %v4873_v5, %v1253_v30  ;;  %v7015_v40 = vsel %vm6489_vm7, %v1255_v48, %v1256_v24  ;;  %v3620_v9 = vrot.slane %v3618_v39, 4  ;;  %v6098_v48 = vld [vmem:[%s6237_s22 + $0x78] sm:$0xff]  }
  0xc3   : > { %v3587_v10 = vor.u32 %v3586_v27, %v3583_v38  ;;  %v3597_v20 = vor.u32 %v3596_v55, %v6990_v37  ;;  %v1260_v30 = vrot.slane %v6149_v8, 5  ;;  %v3611_v38 = vor.u32 %v3610_v12, %v3607_v6  ;;  %v5198_v5 = vld [vmem:[%s6237_s22 + $0x3c] sm:$0xf] }
  0xc4   : > { %5706 = vmatmul.mubr.msk.bf16.gmra.mrb[8].mxu0 %vm631_vm3, %v6093_v61  ;;  %v3578_v61 = vrot.slane %v3576_v25, 5  ;;  %v1147_v25 = vld [vmem:[%s6237_s22 + $0x78] sm:$0xe]  ;;  %v7042_v50 = vrot.slane %v3600_v62, 5  ;;  %v3621_v39 = vor.u32 %v3620_v9, %v7017_v35  ;;  %v3624_v55 = vshll.u32 %v7026_v18, 16 }
  0xc5   : > { %5552 = vmatmul.mubr.msk.bf16.gmra.mrb[24].mxu1 %vm631_vm3, %v8010_v43  ;;  %5709 = vmatprep.mubr.msk.bf16.mxu0 %vm631_vm3, %v6095_v21  ;;  %v3569_v21 = vsel %vm6263_vm4, %v3564_v46, %v6969_v7  ;;  %v4874_v24 = vrot.slane %v1147_v25, 9  ;;  %v6150_v43 = vld [vmem:[%s6237_s22 + $0x88] sm:$0xf]  ;;  %v7050_v7 = vld [vmem:[%s6237_s22 + $0x40] sm:$0xf]  ;;  %v3588_v12 = vrot.slane %v3587_v10, 4  ;;  %v8014_v62 = vcombine.low %v6646_v14, %v6655_v42 }
  0xc6   : > { %5555 = vmatprep.mubr.msk.bf16.mxu1 %vm631_vm3, %v8011_v52  ;;  %v3579_v31 = vsel %vm6263_vm4, %v3574_v54, %v3578_v61  ;;  %v1267_v6 = vrot.slane %v6150_v43, 5  ;;  %8013 = vst [vmem:[#allocation7_spill] sm:$0xff] %v7050_v7  ;;  %v3598_v52 = vrot.slane %v3597_v20, 4  ;;  %v1262_v46 = vrot.slane %v1260_v30, 4  ;;  %v6151_v54 = vld [vmem:[%s6237_s22 + $0x80] sm:$0x1] }
  0xc7   : > { %v1263_v61 = vrot.slane %v6151_v54, 5  ;;  %v3612_v9 = vrot.slane %v3611_v38, 4  ;;  %v4875_v25 = vrot.slane %v1148_v16, 9  ;;  %v3629_v8 = vshrl.u32 %v5198_v5, 16  ;;  %v6099_v10 = vld [vmem:[%s6237_s22 + $0x84] sm:$0xff]  }
  0xc8   : > { %v3632_v43 = vshll.u32 %v5198_v5, 16  ;;  %v7064_v20 = vcombine.low %v3569_v21, %v3579_v31  ;;  %v7068_v14 = vsel %vm680_vm0, %v6868_v26, 0  ;;  %v3642_v38 = vshrl.u32 %v7050_v7, 16  ;;  %v6100_v21 = vld [vmem:[%s6237_s22 + $0x90] sm:$0xff]   ;;  %v6156_v18 = vld [vmem:[%s6237_s22 + $0xa0] sm:$0xf] }
  0xc9   : > { %v3622_v16 = vrot.slane %v3621_v39, 4  ;;  %v3626_v5 = vrot.slane %v3624_v55, 5  ;;  %v1269_v54 = vrot.slane %v1267_v6, 4  ;;  %v3593_v31 = vsel %vm6263_vm4, %v3588_v12, %v6990_v37 }
  0xca   : > { %v3603_v26 = vsel %vm6263_vm4, %v3598_v52, %v7042_v50  ;;  %v7083_v39 = vsel %vm6489_vm7, %v4874_v24, %v1260_v30  ;;  %v7087_v55 = vsel %vm6489_vm7, %v1262_v46, %v1263_v61  ;;  %v3617_v37 = vsel %vm6263_vm4, %v3612_v9, %v7017_v35  ;;  %v5204_v30 = vld [vmem:[%s6237_s22 + $0x54] sm:$0xf]  ;;  %v7104_v24 = vld [vmem:[%s6237_s22 + $0x58] sm:$0xf]  ;;  %v7109_v61 = vld [vmem:[%s6237_s22 + $0x90] sm:$0xe] }
  0xcb   : > { %v7100_v12 = vsel %vm6489_vm7, %v4875_v25, %v1267_v6  ;;  %v3631_v50 = vrot.slane %v3629_v8, 4  ;;  %v3634_v52 = vrot.slane %v3632_v43, 5  ;;  %v3644_v46 = vrot.slane %v3642_v38, 4 }
  0xcc   : > { %5710 = vmatmul.mubr.msk.bf16.gmra.mrb[12].mxu0 %vm631_vm3, %v6097_v33  ;;  %v8015_v33 = vcombine.low %v6853_v0, %v6872_v23  ;;  %v6152_v0 = vld [vmem:[%s6237_s22 + $0x8c] sm:$0x1]  ;;  %v3627_v36 = vsel %vm6263_vm4, %v3622_v16, %v3626_v5  ;;  %v3677_v25 = vshrl.u32 %v5204_v30, 16  ;;  %v3680_v8 = vshll.u32 %v5204_v30, 16 }
  0xcd   : > { %5556 = vmatmul.mubr.msk.bf16.gmra.mrb[28].mxu1 %vm631_vm3, %v8014_v62  ;;  %5713 = vmatprep.mubr.msk.bf16.mxu0 %vm631_vm3, %v6098_v48  ;;  %v3638_v48 = vshll.u32 %v7050_v7, 16  ;;  %v1270_v23 = vrot.slane %v6152_v0, 5  ;;  %v5201_v62 = vld [vmem:[%s6237_s22 + $0x48] sm:$0xf]  ;;  %v7093_v0 = vld [vmem:[%s6237_s22 + $0x4c] sm:$0xf]  ;;  %v8017_v38 = vcombine.low %v6857_v29, %v6861_v53  ;;  %v7127_v16 = vcombine.low %v3593_v31, %v3603_v26 }
  0xce   : > { %5561 = vmatprep.mubr.msk.bf16.mxu1 %vm631_vm3, %v8015_v33  ;;  %v7090_v33 = vld [vmem:[%s6237_s22 + $0x44] sm:$0x1]  ;;  %v3653_v27 = vshrl.u32 %v5201_v62, 16  ;;  %v3656_v15 = vshll.u32 %v5201_v62, 16  ;;  %v3662_v6 = vshll.u32 %v7093_v0, 16  ;;  %v3666_v9 = vshrl.u32 %v7093_v0, 16 }
  0xcf   : > { %8016 = vst [vmem:[#allocation8_spill] sm:$0xff] %v7090_v33  ;;  %v7106_v28 = vrot.slane %v3638_v48, 5  ;;  %v7115_v35 = vsel %vm6489_vm7, %v1269_v54, %v1270_v23  ;;  %v3686_v43 = vshll.u32 %v7104_v24, 16  ;;  %v3690_v48 = vshrl.u32 %v7104_v24, 16  ;;  %v5207_v31 = vld [vmem:[%s6237_s22 + $0x60] sm:$0xf] }
  0xd0   : > { %v3648_v5 = vshll.u32 %v7090_v33, 16  ;;  %v4876_v54 = vrot.slane %v7109_v61, 9  ;;  %v8018_v23 = vcombine.low %v6898_v34, %v6914_v4  ;;  %v7138_v29 = vcombine.low %v3617_v37, %v3627_v36  ;;  %v6101_v26 = vld [vmem:[%s6237_s22 + $0x9c] sm:$0xff]   ;;  %v6102_v30 = vld [vmem:[%s6237_s22 + $0xa8] sm:$0xff]   ;;  %v6153_v36 = vld [vmem:[%s7987_s1 + $0x10] sm:$0xf] }
  0xd1   : > { %v3635_v53 = vor.u32 %v3634_v52, %v3631_v50  ;;  %v3655_v62 = vrot.slane %v3653_v27, 4  ;;  %v7149_v34 = vrot.slane %v3662_v6, 5  ;;  %v3668_v4 = vrot.slane %v3666_v9, 4  ;;  %v6154_v6 = vld [vmem:[%s6237_s22 + $0x94] sm:$0xf] }
  0xd2   : > { %v3679_v27 = vrot.slane %v3677_v25, 4  ;;  %v3682_v37 = vrot.slane %v3680_v8, 5  ;;  %v7158_v50 = vrot.slane %v3686_v43, 5  ;;  %v3692_v52 = vrot.slane %v3690_v48, 4  ;;  %v7164_v9 = vld [vmem:[%s6237_s22 + $0x64] sm:$0xf] }
  0xd3   : > { %8019 = vst [vmem:[#allocation9_spill] sm:$0xff] %v7164_v9  ;;  %v3701_v61 = vshrl.u32 %v5207_v31, 16  ;;  %v7166_v22 = vrot.slane %v3635_v53, 4  ;;  %v1281_v25 = vrot.slane %v6156_v18, 5  ;;  %v3669_v43 = vor.u32 %v3668_v4, %v7149_v34 }
  0xd4   : > { %5714 = vmatmul.mubr.msk.bf16.gmra.mrb[16].mxu0 %vm631_vm3, %v6099_v10  ;;  %v3704_v10 = vshll.u32 %v5207_v31, 16  ;;  %v3683_v31 = vor.u32 %v3682_v37, %v3679_v27  ;;  %v3693_v53 = vor.u32 %v3692_v52, %v7158_v50  ;;  %v8020_v18 = vcombine.low %v6905_v19, %v6918_v58  ;;  %v6103_v37 = vld [vmem:[%s6237_s22 + $0xb4] sm:$0xff]  }
  0xd5   : > { %5562 = vmatmul.mubr.msk.bf16.vlgmr.msra.gmra.mrb[0].mxu1 %vm631_vm3, %v8017_v38  ;;  %5717 = vmatprep.mubr.msk.bf16.mxu0 %vm631_vm3, %v6100_v21  ;;  %v3658_v21 = vrot.slane %v3656_v15, 5  ;;  %v7147_v38 = vld [vmem:[%s6237_s22 + $0x50] sm:$0x1]  ;;  %v7156_v15 = vld [vmem:[%s6237_s22 + $0x5c] sm:$0x1]  ;;  %v8021_v27 = vcombine.low %v6923_v2, %v6927_v1  ;;  %v1283_v52 = vrot.slane %v1281_v25, 4 }
  0xd6   : > { %5594 = vmatpush3.bf16.msra.mxu1 %v6894_v49  ;;  %5565 = vmatprep.mubr.msk.bf16.mxu1 %vm631_vm3, %v8018_v23  ;;  %v3645_v49 = vor.u32 %v3644_v46, %v7106_v28  ;;  %v7160_v46 = vrot.slane %v3648_v5, 5  ;;  %v1274_v23 = vrot.slane %v6154_v6, 5  ;;  %v3672_v48 = vshll.u32 %v7147_v38, 16  ;;  %v1150_v5 = vld [vmem:[%s6237_s22 + $0x9c] sm:$0xe] }
  0xd7   : > { %6060 = vmatprep.subr.msk.bf16.mxu1 %vm680_vm0, %v6153_v36  ;;  %v6155_v36 = vld [vmem:[%s6237_s22 + $0x98] sm:$0x1]  ;;  %v3659_v7 = vor.u32 %v3658_v21, %v3655_v62  ;;  %v3696_v6 = vshll.u32 %v7156_v15, 16  ;;  %v3714_v62 = vshrl.u32 %v7164_v9, 16  ;;  %v3706_v4 = vrot.slane %v3704_v10, 5 }
  0xd8   : > { %v1277_v33 = vrot.slane %v6155_v36, 5  ;;  %v3646_v8 = vrot.slane %v3645_v49, 4  ;;  %v3710_v36 = vshll.u32 %v7164_v9, 16  ;;  %v7185_v21 = vsel %vm6489_vm7, %v4876_v54, %v1274_v23  ;;  %v7196_v2 = vld [vmem:[%s6237_s22 + $0x68] sm:$0x1] }
  0xd9   : > { %v3703_v49 = vrot.slane %v3701_v61, 4  ;;  %v3660_v19 = vrot.slane %v3659_v7, 4  ;;  %v4877_v58 = vrot.slane %v1150_v5, 9  ;;  %v3670_v3 = vrot.slane %v3669_v43, 4  ;;  %8022 = vst [vmem:[#allocation10_spill] sm:$0xff] %v7196_v2  ;;  %v6104_v5 = vld [vmem:[%s6237_s22 + $0xc0] sm:$0xff]  }
  0xda   : > { %v3674_v54 = vrot.slane %v3672_v48, 5  ;;  %v3698_v63 = vrot.slane %v3696_v6, 5  ;;  %v1288_v61 = vrot.slane %v6631_v56, 5  ;;  %v3684_v10 = vrot.slane %v3683_v31, 4  ;;  %v1152_v31 = vld [vmem:[%s6237_s22 + $0xb4] sm:$0xe] }
  0xdb   : > { %v3694_v51 = vrot.slane %v3693_v53, 4  ;;  %v7198_v1 = vrot.slane %v3710_v36, 5  ;;  %v3716_v7 = vrot.slane %v3714_v62, 4  ;;  %v3641_v43 = vsel %vm6263_vm4, %v7166_v22, %v7106_v28  ;;  %v6158_v62 = vld [vmem:[%s6237_s22 + $0xb0] sm:$0x1] }
  0xdc   : > { %5718 = vmatmul.mubr.msk.bf16.gmra.mrb[20].mxu0 %vm631_vm3, %v6101_v26  ;;  %v1276_v26 = vrot.slane %v1274_v23, 4  ;;  %v1151_v23 = vld [vmem:[%s6237_s22 + $0xa8] sm:$0xe]  ;;  %v3651_v48 = vsel %vm6263_vm4, %v3646_v8, %v7160_v46  ;;  %v3707_v6 = vor.u32 %v3706_v4, %v3703_v49  ;;  %v3665_v53 = vsel %vm6263_vm4, %v3660_v19, %v7149_v34  ;;  %v5210_v46 = vld [vmem:[%s6237_s22 + $0x6c] sm:$0xf] }
  0xdd   : > { %5566 = vmatmul.mubr.msk.bf16.gmra.mrb[4].mxu1 %vm631_vm3, %v8020_v18  ;;  %5721 = vmatprep.mubr.msk.bf16.mxu0 %vm631_vm3, %v6102_v30  ;;  %v6157_v18 = vld [vmem:[%s6237_s22 + $0xa4] sm:$0x1]  ;;  %v7218_v36 = vsel %vm6489_vm7, %v4877_v58, %v1281_v25  ;;  %v4878_v28 = vrot.slane %v1151_v23, 9  ;;  %v1290_v8 = vrot.slane %v1288_v61, 4  ;;  %v3720_v49 = vshll.u32 %v7196_v2, 16 }
  0xde   : > { %5569 = vmatprep.mubr.msk.bf16.mxu1 %vm631_vm3, %v8021_v27  ;;  %v1284_v30 = vrot.slane %v6157_v18, 5  ;;  %v7210_v56 = vsel %vm6489_vm7, %v1276_v26, %v1277_v33  ;;  %v3675_v33 = vsel %vm6263_vm4, %v3670_v3, %v3674_v54  ;;  %v1291_v26 = vrot.slane %v6158_v62, 5  ;;  %v5213_v18 = vld [vmem:[%s6237_s22 + $0x78] sm:$0xf]  ;;  %v7273_v54 = vld [vmem:[%s6237_s22 + $0xbc] sm:$0x1] }
  0xdf   : > { %v3689_v34 = vsel %vm6263_vm4, %v3684_v10, %v7158_v50  ;;  %v3699_v25 = vsel %vm6263_vm4, %v3694_v51, %v3698_v63  ;;  %v3717_v4 = vor.u32 %v3716_v7, %v7198_v1  ;;  %v4879_v27 = vrot.slane %v1152_v31, 9  ;;  %v7247_v51 = vld [vmem:[%s6237_s22 + $0x70] sm:$0xf]  ;;  %v7277_v10 = vld [vmem:[%s6237_s22 + $0x7c] sm:$0xf] }
  0xe0   : > { %v7222_v22 = vsel %vm6489_vm7, %v1283_v52, %v1284_v30  ;;  %v8024_v3 = vcombine.low %v6940_v45, %v6944_v59  ;;  %v7243_v19 = vrot.slane %v3707_v6, 4  ;;  %v1295_v50 = vrot.slane %v6655_v42, 5  ;;  %8025 = vst [vmem:[#allocation12_spill] sm:$0xff] %v7247_v51  ;;  %8027 = vst [vmem:[#allocation13_spill] sm:$0xff] %v7277_v10  ;;  %v5216_v7 = vld [vmem:[%s6237_s22 + $0x84] sm:$0xf] }
  0xe1   : > { %8023 = vst [vmem:[#allocation11_spill] sm:$0xff] %v7222_v22  ;;  %v3725_v63 = vshrl.u32 %v5210_v46, 16  ;;  %v8026_v45 = vcombine.low %v6948_v47, %v6975_v41  ;;  %v7255_v58 = vcombine.low %v3665_v53, %v3675_v33  ;;  %v7261_v42 = vsel %vm6489_vm7, %v4878_v28, %v1288_v61  ;;  %v6105_v61 = vld [vmem:[%s6237_s22 + $0xcc] sm:$0xff]   ;;  %v7289_v31 = vld [vmem:[%s6237_s22 + $0x88] sm:$0xf] }
  0xe2   : > { %v7264_v30 = vcombine.low %v3689_v34, %v3699_v25  ;;  %v7268_v47 = vsel %vm6489_vm7, %v1290_v8, %v1291_v26  ;;  %v7270_v41 = vrot.slane %v3720_v49, 5  ;;  %v3734_v6 = vshll.u32 %v7247_v51, 16  ;;  %8028 = vst [vmem:[#allocation14_spill] sm:$0xff] %v7289_v31  ;;  %v5219_v62 = vld [vmem:[%s6237_s22 + $0x90] sm:$0xf] }
  0xe3   : > { %v7295_v28 = vrot.slane %v1295_v50, 4  ;;  %v7297_v33 = vrot.slane %v3725_v63, 4  ;;  %v3738_v8 = vshrl.u32 %v7247_v51, 16  ;;  %v3749_v26 = vshrl.u32 %v5213_v18, 16  ;;  %v7304_v25 = vld [vmem:[%s6237_s22 + $0x94] sm:$0xf] }
  0xe4   : > { %5722 = vmatmul.mubr.msk.bf16.gmra.mrb[24].mxu0 %vm631_vm3, %v6103_v37  ;;  %v7241_v37 = vcombine.low %v3641_v43, %v3651_v48  ;;  %v7285_v43 = vsel %vm6489_vm7, %v4879_v27, %v1295_v50  ;;  %v3728_v48 = vshll.u32 %v5210_v46, 16  ;;  %v3752_v49 = vshll.u32 %v5213_v18, 16  ;;  %8029 = vst [vmem:[#allocation15_spill] sm:$0xff] %v7304_v25  ;;  %v7342_v2 = vld [vmem:[%s6237_s22 + $0x8c] sm:$0x1] }
  0xe5   : > { %5570 = vmatmul.mubr.msk.bf16.gmra.mrb[8].mxu1 %vm631_vm3, %v8024_v3  ;;  %5725 = vmatprep.mubr.msk.bf16.mxu0 %vm631_vm3, %v6104_v5  ;;  %v7281_v5 = vrot.slane %v3717_v4, 4  ;;  %v3758_v46 = vshll.u32 %v7277_v10, 16  ;;  %v3762_v34 = vshrl.u32 %v7277_v10, 16  ;;  %v3773_v4 = vshrl.u32 %v5216_v7, 16 }
  0xe6   : > { %5573 = vmatprep.mubr.msk.bf16.mxu1 %vm631_vm3, %v8026_v45  ;;  %v3776_v27 = vshll.u32 %v5216_v7, 16  ;;  %v3782_v3 = vshll.u32 %v7289_v31, 16  ;;  %v3786_v50 = vshrl.u32 %v7289_v31, 16  ;;  %v7314_v45 = vld [vmem:[%s6237_s22 + $0x74] sm:$0x1]  ;;  %v3730_v18 = vrot.slane %v3728_v48, 5 }
  0xe7   : > { %v3797_v52 = vshrl.u32 %v5219_v62, 16  ;;  %v3800_v53 = vshll.u32 %v5219_v62, 16  ;;  %v8030_v7 = vcombine.low %v6959_v60, %v6984_v44  ;;  %v3740_v59 = vrot.slane %v3738_v8, 4  ;;  %v5222_v48 = vld [vmem:[%s6237_s22 + $0x9c] sm:$0xf] }
  0xe8   : > { %v3806_v63 = vshll.u32 %v7304_v25, 16  ;;  %v3810_v23 = vshrl.u32 %v7304_v25, 16  ;;  %v8031_v62 = vcombine.low %v6999_v17, %v7003_v57  ;;  %v7332_v44 = vld [vmem:[%s6237_s22 + $0x80] sm:$0x1]  ;;  %v3751_v60 = vrot.slane %v3749_v26, 4 }
  0xe9   : > { %8032 = vst [vmem:[#allocation16_spill] sm:$0xff] %v7332_v44  ;;  %v3775_v31 = vrot.slane %v3773_v4, 4  ;;  %v3778_v8 = vrot.slane %v3776_v27, 5  ;;  %v7336_v10 = vrot.slane %v3782_v3, 5  ;;  %v3788_v51 = vrot.slane %v3786_v50, 4 }
  0xea   : > { %v7339_v25 = vld [vmem:[%s6237_s22 + $0xa0] sm:$0xf]  ;;  %v3799_v17 = vrot.slane %v3797_v52, 4  ;;  %v3802_v57 = vrot.slane %v3800_v53, 5  ;;  %v3824_v9 = vshll.u32 %v5222_v48, 16  ;;  %v3731_v26 = vor.u32 %v3730_v18, %v7297_v33 }
  0xeb   : > { %v3768_v27 = vshll.u32 %v7332_v44, 16  ;;  %v7351_v3 = vld [vmem:[%s6237_s22 + $0x98] sm:$0x1]  ;;  %v3830_v50 = vshll.u32 %v7339_v25, 16  ;;  %v3834_v52 = vshrl.u32 %v7339_v25, 16  ;;  %v3779_v22 = vor.u32 %v3778_v8, %v3775_v31 }
  0xec   : > { %5726 = vmatmul.mubr.msk.bf16.gmra.mrb[28].mxu0 %vm631_vm3, %v6105_v61  ;;  %v7322_v61 = vrot.slane %v3734_v6, 5  ;;  %v3764_v6 = vrot.slane %v3762_v34, 4  ;;  %v3812_v34 = vrot.slane %v3810_v23, 4  ;;  %v3792_v33 = vshll.u32 %v7342_v2, 16 }
  0xed   : > { %5574 = vmatmul.mubr.msk.bf16.gmra.mrb[12].mxu1 %vm631_vm3, %v8030_v7  ;;  %5731 = vmatprep.mubr.msk.bf16.mxu0 %vm631_vm3, %v7064_v20  ;;  %v3754_v7 = vrot.slane %v3752_v49, 5  ;;  %v7334_v20 = vrot.slane %v3758_v46, 5  ;;  %v3744_v49 = vshll.u32 %v7314_v45, 16  ;;  %v7346_v46 = vrot.slane %v3806_v63, 5 }
  0xee   : > { %5577 = vmatprep.mubr.msk.bf16.mxu1 %vm631_vm3, %v8031_v62  ;;  %v3821_v62 = vshrl.u32 %v5222_v48, 16  ;;  %v3741_v4 = vor.u32 %v3740_v59, %v7322_v61  ;;  %v3789_v23 = vor.u32 %v3788_v51, %v7336_v10  ;;  %v3803_v59 = vor.u32 %v3802_v57, %v3799_v17  ;;  %v7384_v57 = vld [vmem:[%s6237_s22 + $0xa4] sm:$0x1] }
  0xef   : > { %v3755_v53 = vor.u32 %v3754_v7, %v3751_v60  ;;  %v3765_v48 = vor.u32 %v3764_v6, %v7334_v20  ;;  %v3826_v18 = vrot.slane %v3824_v9, 5  ;;  %v8033_v44 = vcombine.low %v7011_v11, %v7015_v40 }
  0xf0   : > { %v3823_v63 = vrot.slane %v3821_v62, 4  ;;  %v8034_v31 = vrot.slane %v7273_v54, 5  ;;  %v3746_v51 = vrot.slane %v3744_v49, 5  ;;  %v3813_v60 = vor.u32 %v3812_v34, %v7346_v46  ;;  %v7387_v34 = vld [vmem:[%s6237_s22 + $0xac] sm:$0xf] }
  0xf1   : > { %v3816_v9 = vshll.u32 %v7351_v3, 16  ;;  %v8035_v11 = vcombine.low %v7083_v39, %v7087_v55  ;;  %v3732_v40 = vrot.slane %v3731_v26, 4  ;;  %v7380_v54 = vrot.slane %v3830_v50, 5 }
  0xf2   : > { %v3756_v7 = vrot.slane %v3755_v53, 4  ;;  %v3766_v6 = vrot.slane %v3765_v48, 4  ;;  %v3770_v8 = vrot.slane %v3768_v27, 5  ;;  %v3794_v17 = vrot.slane %v3792_v33, 5  ;;  %v7397_v48 = vld [vmem:[%s6237_s22 + $0xb0] sm:$0x1] }
  0xf3   : > { %v3780_v39 = vrot.slane %v3779_v22, 4  ;;  %v3790_v55 = vrot.slane %v3789_v23, 4  ;;  %v3804_v62 = vrot.slane %v3803_v59, 4  ;;  %v3827_v49 = vor.u32 %v3826_v18, %v3823_v63 }
  0xf4   : > { %5732 = vmatmul.mubr.msk.bf16.vlgmr.msra.gmra.mrb[0].mxu0 %vm631_vm3, %v7127_v16  ;;  %v7370_v16 = vsel %vm6489_vm7, %v7295_v28, %v8034_v31  ;;  %v3836_v28 = vrot.slane %v3834_v52, 4  ;;  %v3818_v26 = vrot.slane %v3816_v9, 5  ;;  %v3737_v52 = vsel %vm6263_vm4, %v3732_v40, %v7322_v61 }
  0xf5   : > { %5578 = vmatmul.mubr.msk.bf16.gmra.mrb[16].mxu1 %vm631_vm3, %v8033_v44  ;;  %5764 = vmatpush3.bf16.msra.mxu0 %v7068_v14  ;;  %v3742_v14 = vrot.slane %v3741_v4, 4  ;;  %v5225_v44 = vld [vmem:[%s6237_s22 + $0xa8] sm:$0xf]  ;;  %v3840_v22 = vshll.u32 %v7384_v57, 16  ;;  %v3761_v33 = vsel %vm6263_vm4, %v3756_v7, %v7334_v20  ;;  %v3771_v23 = vsel %vm6263_vm4, %v3766_v6, %v3770_v8 }
  0xf6   : > { %5581 = vmatprep.mubr.msk.bf16.mxu1 %vm631_vm3, %v8035_v11  ;;  %5735 = vmatprep.mubr.msk.bf16.mxu0 %vm631_vm3, %v7138_v29  ;;  %v3814_v29 = vrot.slane %v3813_v60, 4  ;;  %v3845_v4 = vshrl.u32 %v5225_v44, 16  ;;  %v3848_v50 = vshll.u32 %v5225_v44, 16  ;;  %v3837_v53 = vor.u32 %v3836_v28, %v7380_v54  ;;  %v5274_v11 = vld [vmem:[%s6237_s22 + $0x48] sm:$0xe] }
  0xf7   : > { %v3747_v27 = vsel %vm6263_vm4, %v3742_v14, %v3746_v51  ;;  %v3854_v59 = vshll.u32 %v7387_v34, 16  ;;  %v3858_v61 = vshrl.u32 %v7387_v34, 16  ;;  %v3785_v63 = vsel %vm6263_vm4, %v3780_v39, %v7336_v10  ;;  %v7462_v39 = vld [vmem:[%s6237_s22 + $0xb8] sm:$0xf] }
  0xf8   : > { %v3795_v18 = vsel %vm6263_vm4, %v3790_v55, %v3794_v17  ;;  %v3809_v20 = vsel %vm6263_vm4, %v3804_v62, %v7346_v46  ;;  %v3828_v31 = vrot.slane %v3827_v49, 4  ;;  %v8036_v51 = vcombine.low %v7100_v12, %v7115_v35 }
  0xf9   : > { %v3847_v10 = vrot.slane %v3845_v4, 4  ;;  %v3850_v60 = vrot.slane %v3848_v50, 5  ;;  %v3864_v9 = vshll.u32 %v7397_v48, 16  ;;  %v8037_v46 = vcombine.low %v7185_v21, %v7210_v56  ;;  %v5228_v21 = vld [vmem:[%s6237_s22 + $0xb4] sm:$0xf] }
  0xfa   : > { %v4895_v12 = vcombine.low %v7261_v42, %v7268_v47  ;;  %v8038_v35 = vsel %vm6263_vm4, %v7281_v5, %v7270_v41  ;;  %v3838_v14 = vrot.slane %v3837_v53, 4  ;;  %v3842_v28 = vrot.slane %v3840_v22, 5  ;;  %v5276_v4 = vld [vmem:[%s6237_s22 + $0x60] sm:$0xe]  ;;  %v5277_v53 = vld [vmem:[%s6237_s22 + $0x6c] sm:$0xe] }
  0xfb   : > { %v4896_v56 = vcombine.low %v7285_v43, %v7370_v16  ;;  %v7445_v44 = vcombine.low %v3737_v52, %v3747_v27  ;;  %v7447_v42 = vrot.slane %v3854_v59, 5  ;;  %v3860_v47 = vrot.slane %v3858_v61, 4  ;;  %v8047_v16 = vld [vmem:[#allocation4_spill] sm:$0xff] }
  0xfc   : > { %5736 = vmatmul.mubr.msk.bf16.gmra.mrb[4].mxu0 %vm631_vm3, %v7241_v37  ;;  %v3819_v37 = vsel %vm6263_vm4, %v3814_v29, %v3818_v26  ;;  %v7449_v41 = vcombine.low %v3761_v33, %v3771_v23  ;;  %v7451_v5 = vcombine.low %v3785_v63, %v3795_v18  ;;  %v3833_v6 = vsel %vm6263_vm4, %v3828_v31, %v7380_v54  ;;  %v8040_v23 = vld [vmem:[#allocation11_spill] sm:$0xff]  ;;  %v5231_v63 = vld [vmem:[%s6237_s22 + $0xc0] sm:$0xf]  ;;  %v8042_v18 = vld [vmem:[#allocation9_spill] sm:$0xff] }
  0xfd   : > { %5582 = vmatmul.mubr.msk.bf16.gmra.mrb[20].mxu1 %vm631_vm3, %v8036_v51  ;;  %5739 = vmatprep.mubr.msk.bf16.mxu0 %vm631_vm3, %v7255_v58  ;;  %v8039_v58 = vsel %vm6263_vm4, %v7243_v19, %v7198_v1  ;;  %v7453_v7 = vcombine.low %v3809_v20, %v3819_v37  ;;  %v5290_v1 = vrot.slane %v5274_v11, 9  ;;  %v5275_v19 = vld [vmem:[%s6237_s22 + $0x54] sm:$0xe]  ;;  %v3851_v8 = vor.u32 %v3850_v60, %v3847_v10  ;;  %v8043_v31 = vld [vmem:[#allocation10_spill] sm:$0xff] }
  0xfe   : > { %5585 = vmatprep.mubr.msk.bf16.mxu1 %vm631_vm3, %v8037_v46  ;;  %v5244_v40 = vcombine.low %v8039_v58, %v8038_v35  ;;  %v7459_v17 = vrot.slane %v3864_v9, 5  ;;  %v3869_v55 = vshrl.u32 %v5228_v21, 16  ;;  %v3843_v62 = vsel %vm6263_vm4, %v3838_v14, %v3842_v28  ;;  %v8044_v9 = vld [vmem:[#allocation12_spill] sm:$0xff]  ;;  %v7511_v35 = vld [vmem:[%s6237_s22 + $0xbc] sm:$0x1] }
  0xff   : > { %v3872_v49 = vshll.u32 %v5228_v21, 16  ;;  %v4328_v29 = vrot.slane %v7093_v0, 5  ;;  %v4331_v26 = vrot.slane %v7147_v38, 5  ;;  %v3861_v50 = vor.u32 %v3860_v47, %v7447_v42  ;;  %v7514_v58 = vld [vmem:[%s6237_s22 + $0xc4] sm:$0xf] }
 0x100   : > { %v5291_v52 = vrot.slane %v5275_v19, 9  ;;  %v4335_v54 = vrot.slane %v7104_v24, 5  ;;  %v4338_v27 = vrot.slane %v7156_v15, 5  ;;  %v3878_v22 = vshll.u32 %v7462_v39, 16  ;;  %v5278_v19 = vld [vmem:[%s6237_s22 + $0x78] sm:$0xe] }
 0x101   : > { %v3882_v33 = vshrl.u32 %v7462_v39, 16  ;;  %v7479_v0 = vsel %vm6489_vm7, %v5290_v1, %v4328_v29  ;;  %v4330_v38 = vrot.slane %v4328_v29, 4  ;;  %v8041_v59 = vcombine.low %v7218_v36, %v8040_v23  ;;  %v8045_v23 = vld [vmem:[#allocation13_spill] sm:$0xff] }
 0x102   : > { %v7486_v24 = vcombine.low %v3833_v6, %v3843_v62  ;;  %v7490_v15 = vsel %vm6489_vm7, %v5291_v52, %v4335_v54  ;;  %v5292_v61 = vrot.slane %v5276_v4, 9  ;;  %v4342_v20 = vrot.slane %v8042_v18, 5  ;;  %v6106_v6 = vld [vmem:[%s6237_s22 + $0xc] sm:$0xff]  }
 0x103   : > { %v7496_v36 = vsel %vm6489_vm7, %v4330_v38, %v4331_v26  ;;  %v4345_v51 = vrot.slane %v8043_v31, 5  ;;  %v5293_v37 = vrot.slane %v5277_v53, 9  ;;  %v4349_v11 = vrot.slane %v8044_v9, 5 }
 0x104   : > { %5740 = vmatmul.mubr.msk.bf16.gmra.mrb[8].mxu0 %vm631_vm3, %v7264_v30  ;;  %v4337_v30 = vrot.slane %v4335_v54, 4  ;;  %v5307_v10 = vcombine.low %v7479_v0, %v7496_v36  ;;  %v4352_v46 = vrot.slane %v7314_v45, 5  ;;  %v7520_v14 = vsel %vm6489_vm7, %v5292_v61, %v4342_v20 }
 0x105   : > { %5586 = vmatmul.mubr.msk.bf16.gmra.mrb[24].mxu1 %vm631_vm3, %v8041_v59  ;;  %5743 = vmatprep.mubr.msk.bf16.mxu0 %vm631_vm3, %v5244_v40  ;;  %v4344_v28 = vrot.slane %v4342_v20, 4  ;;  %v7522_v21 = vrot.slane %v3869_v55, 4  ;;  %v3893_v47 = vshrl.u32 %v5231_v63, 16  ;;  %v7526_v45 = vsel %vm6489_vm7, %v5293_v37, %v4349_v11  ;;  %v5005_v55 = vld [vmem:[%s6237_s22 + $0x78] sm:$0xf]  ;;  %v8046_v59 = vld [vmem:[#allocation16_spill] sm:$0xff] }
 0x106   : > { %5589 = vmatprep.mubr.msk.bf16.mxu1 %vm631_vm3, %v4895_v12  ;;  %v7504_v60 = vsel %vm6489_vm7, %v4337_v30, %v4338_v27  ;;  %v7508_v12 = vrot.slane %v3851_v8, 4  ;;  %v4351_v1 = vrot.slane %v4349_v11, 4  ;;  %v7530_v8 = vrot.slane %v3861_v50, 4 }
 0x107   : > { %v5308_v40 = vcombine.low %v7490_v15, %v7504_v60  ;;  %v7532_v62 = vrot.slane %v3872_v49, 5  ;;  %v3896_v29 = vshll.u32 %v5231_v63, 16  ;;  %v7536_v26 = vsel %vm6489_vm7, %v4344_v28, %v4345_v51  ;;  %v8049_v28 = vld [vmem:[#allocation14_spill] sm:$0xff] }
 0x108   : > { %v7539_v4 = vrot.slane %v3878_v22, 5  ;;  %v7541_v52 = vrot.slane %v3882_v33, 4  ;;  %v5309_v54 = vcombine.low %v7520_v14, %v7536_v26  ;;  %v7547_v27 = vsel %vm6489_vm7, %v4351_v1, %v4352_v46  ;;  %v5279_v33 = vld [vmem:[%s6237_s22 + $0x84] sm:$0xe]  ;;  %v6107_v1 = vld [vmem:[%s6237_s22 + $0x18] sm:$0xff]  }
 0x109   : > { %v3888_v49 = vshll.u32 %v7511_v35, 16  ;;  %v3902_v50 = vshll.u32 %v7514_v58, 16  ;;  %v5310_v53 = vcombine.low %v7526_v45, %v7547_v27  ;;  %v5294_v22 = vrot.slane %v5278_v19, 9  ;;  %v6169_v60 = vld [vmem:[%s6237_s22 + $0xa0] sm:$0xf] }
 0x10a   : > { %v3895_v38 = vrot.slane %v3893_v47, 4  ;;  %v4359_v30 = vrot.slane %v8046_v59, 5  ;;  %v2218_v61 = vshrl.u32 %v5005_v55, 16  ;;  %v3898_v63 = vrot.slane %v3896_v29, 5  ;;  %v5234_v29 = vld [vmem:[%s6237_s22 + $0xcc] sm:$0xf] }
 0x10b   : > { %v3906_v18 = vshrl.u32 %v7514_v58, 16  ;;  %v2221_v43 = vshll.u32 %v5005_v55, 16  ;;  %v5295_v37 = vrot.slane %v5279_v33, 9  ;;  %v3857_v9 = vsel %vm6263_vm4, %v7508_v12, %v7447_v42  ;;  %v7590_v55 = vld [vmem:[%s6237_s22 + $0xd0] sm:$0xf] }
 0x10c   : > { %5744 = vmatmul.mubr.msk.bf16.gmra.mrb[12].mxu0 %vm631_vm3, %v7445_v44  ;;  %v4356_v44 = vrot.slane %v8045_v23, 5  ;;  %v2220_v51 = vrot.slane %v2218_v61, 4  ;;  %v3875_v11 = vor.u32 %v7532_v62, %v7522_v21  ;;  %v4363_v47 = vrot.slane %v8049_v28, 5  ;;  %v6108_v21 = vld [vmem:[%s6237_s22 + $0x24] sm:$0xff]   ;;  %v6173_v27 = vld [vmem:[%s6237_s22 + $0xac] sm:$0xf] }
 0x10d   : > { %5590 = vmatmul.mubr.msk.bf16.gmra.mrb[28].mxu1 %vm631_vm3, %v4896_v56  ;;  %5747 = vmatprep.mubr.msk.bf16.mxu0 %vm631_vm3, %v7449_v41  ;;  %v8048_v56 = vld [vmem:[#allocation5_spill] sm:$0xff]  ;;  %v2223_v46 = vrot.slane %v2221_v43, 5  ;;  %v3867_v19 = vsel %vm6263_vm4, %v7530_v8, %v7459_v17  ;;  %v4366_v12 = vrot.slane %v7342_v2, 5  ;;  %v7598_v62 = vrot.slane %v3902_v50, 5  ;;  %v5280_v8 = vld [vmem:[%s6237_s22 + $0x90] sm:$0xe] }
 0x10e   : > { %5595 = vmatprep.mubr.msk.bf16.mxu1 %vm631_vm3, %v6106_v6  ;;  %v2240_v41 = vsel %vm6263_vm4, %v8048_v56, %v8047_v16  ;;  %v7572_v20 = vsel %vm6489_vm7, %v5294_v22, %v4356_v44  ;;  %v4358_v31 = vrot.slane %v4356_v44, 4  ;;  %v3885_v6 = vor.u32 %v7541_v52, %v7539_v4  ;;  %v7604_v52 = vld [vmem:[%s6237_s22 + $0xc8] sm:$0x1]  ;;  %v8051_v16 = vld [vmem:[#allocation2_spill] sm:$0xff] }
 0x10f   : > { %v3908_v22 = vrot.slane %v3906_v18, 4  ;;  %v2224_v17 = vor.u32 %v2223_v46, %v2220_v51  ;;  %v3890_v23 = vrot.slane %v3888_v49, 5  ;;  %v3899_v44 = vor.u32 %v3898_v63, %v3895_v38  ;;  %v8052_v51 = vld [vmem:[#allocation3_spill] sm:$0xff] }
 0x110   : > { %v7594_v42 = vsel %vm6489_vm7, %v4358_v31, %v4359_v30  ;;  %v7608_v59 = vsel %vm6489_vm7, %v5295_v37, %v4363_v47  ;;  %v4365_v30 = vrot.slane %v4363_v47, 4  ;;  %v3917_v2 = vshrl.u32 %v5234_v29, 16 }
 0x111   : > { %v5311_v33 = vcombine.low %v7572_v20, %v7594_v42  ;;  %v3920_v50 = vshll.u32 %v5234_v29, 16  ;;  %v3926_v61 = vshll.u32 %v7590_v55, 16  ;;  %v2225_v18 = vrot.slane %v2224_v17, 4  ;;  %v6109_v29 = vld [vmem:[%s6237_s22 + $0x30] sm:$0xff]  }
 0x112   : > { %v3930_v49 = vshrl.u32 %v7590_v55, 16  ;;  %v7619_v38 = vsel %vm6489_vm7, %v4365_v30, %v4366_v12  ;;  %v5296_v63 = vrot.slane %v5280_v8, 9  ;;  %v3909_v56 = vor.u32 %v3908_v22, %v7598_v62 }
 0x113   : > { %v3912_v31 = vshll.u32 %v7604_v52, 16  ;;  %v5312_v37 = vcombine.low %v7608_v59, %v7619_v38  ;;  %v5250_v46 = vcombine.low %v3857_v9, %v3867_v19  ;;  %v3876_v28 = vrot.slane %v3875_v11, 4  ;;  %v5281_v11 = vld [vmem:[%s6237_s22 + $0x9c] sm:$0xe] }
 0x114   : > { %5748 = vmatmul.mubr.msk.bf16.gmra.mrb[16].mxu0 %vm631_vm3, %v7451_v5  ;;  %v8050_v5 = vld [vmem:[#allocation15_spill] sm:$0xff]  ;;  %v3886_v47 = vrot.slane %v3885_v6, 4  ;;  %v3900_v12 = vrot.slane %v3899_v44, 4  ;;  %v4373_v8 = vrot.slane %v7351_v3, 5  ;;  %v3919_v30 = vrot.slane %v3917_v2, 4  ;;  %v6110_v19 = vld [vmem:[%s6237_s22 + $0x3c] sm:$0xff]  }
 0x115   : > { %5596 = vmatmul.mubr.msk.bf16.vlgmr.msra.gmra.mrb[0].mxu1 %vm631_vm3, %v6107_v1  ;;  %5751 = vmatprep.mubr.msk.bf16.mxu0 %vm631_vm3, %v7453_v7  ;;  %v4370_v43 = vrot.slane %v8050_v5, 5  ;;  %v2230_v7 = vsel %vm6263_vm4, %v2225_v18, %v8052_v51  ;;  %v3922_v18 = vrot.slane %v3920_v50, 5  ;;  %v7642_v5 = vrot.slane %v3926_v61, 5 }
 0x116   : > { %5798 = vmatpush3.bf16.msra.mxu1 %v8051_v16  ;;  %5599 = vmatprep.mubr.msk.bf16.mxu1 %vm631_vm3, %v6108_v21  ;;  %v7631_v1 = vcombine.low %v2230_v7, %v2240_v41  ;;  %v7635_v21 = vld [vmem:[%s6237_s22 + $0xd4] sm:$0x1]  ;;  %v3932_v9 = vrot.slane %v3930_v49, 4  ;;  %v3910_v41 = vrot.slane %v3909_v56, 4  ;;  %v3914_v6 = vrot.slane %v3912_v31, 5 }
 0x117   : > { %v7639_v22 = vsel %vm6489_vm7, %v5296_v63, %v4370_v43  ;;  %v4372_v17 = vrot.slane %v4370_v43, 4  ;;  %v3881_v63 = vsel %vm6263_vm4, %v3876_v28, %v7539_v4  ;;  %v3891_v2 = vsel %vm6263_vm4, %v3886_v47, %v3890_v23  ;;  %v6160_v16 = vld [vmem:[%s6237_s22 + $0x1c] sm:$0xf]  ;;  %v5282_v28 = vld [vmem:[%s6237_s22 + $0xa8] sm:$0xe] }
 0x118   : > { %v3936_v50 = vshll.u32 %v7635_v21, 16  ;;  %v5297_v61 = vrot.slane %v5281_v11, 9  ;;  %v4377_v49 = vrot.slane %v7339_v25, 5  ;;  %v3905_v4 = vsel %vm6263_vm4, %v3900_v12, %v7598_v62  ;;  %v5270_v62 = vld [vmem:[%s6237_s22 + $0x18] sm:$0xe]  ;;  %v6111_v47 = vld [vmem:[%s6237_s22 + $0x48] sm:$0xff]  }
 0x119   : > { %v7648_v44 = vsel %vm6489_vm7, %v4372_v17, %v4373_v8  ;;  %v3933_v43 = vor.u32 %v3932_v9, %v7642_v5  ;;  %v4380_v23 = vrot.slane %v7384_v57, 5  ;;  %v3915_v25 = vsel %vm6263_vm4, %v3910_v41, %v3914_v6  ;;  %v6161_v11 = vld [vmem:[%s6237_s22 + $0x20] sm:$0x1] }
 0x11a   : > { %v5313_v3 = vcombine.low %v7639_v22, %v7648_v44  ;;  %v4300_v56 = vrot.slane %v6160_v16, 5  ;;  %v7674_v31 = vsel %vm6489_vm7, %v5297_v61, %v4377_v49  ;;  %v4379_v51 = vrot.slane %v4377_v49, 4  ;;  %v5283_v49 = vld [vmem:[%s6237_s22 + $0xb4] sm:$0xe] }
 0x11b   : > { %v5251_v7 = vcombine.low %v3881_v63, %v3891_v2  ;;  %v3934_v17 = vrot.slane %v3933_v43, 4  ;;  %v5298_v41 = vrot.slane %v5282_v28, 9  ;;  %v4384_v6 = vrot.slane %v7387_v34, 5  ;;  %v5271_v2 = vld [vmem:[%s6237_s22 + $0x24] sm:$0xe] }
 0x11c   : > { %5752 = vmatmul.mubr.msk.bf16.gmra.mrb[20].mxu0 %vm631_vm3, %v7486_v24  ;;  %v3923_v24 = vor.u32 %v3922_v18, %v3919_v30  ;;  %v7679_v57 = vsel %vm6489_vm7, %v4379_v51, %v4380_v23  ;;  %v6112_v30 = vld [vmem:[%s6237_s22 + $0x54] sm:$0xff]   ;;  %v5286_v18 = vrot.slane %v5270_v62, 9  ;;  %v4302_v9 = vrot.slane %v4300_v56, 4  ;;  %v6164_v28 = vld [vmem:[%s6237_s22 + $0x2c] sm:$0x1] }
 0x11d   : > { %5600 = vmatmul.mubr.msk.bf16.gmra.mrb[4].mxu1 %vm631_vm3, %v6109_v29  ;;  %5755 = vmatprep.mubr.msk.bf16.mxu0 %vm631_vm3, %v5250_v46  ;;  %v3938_v46 = vrot.slane %v3936_v50, 5  ;;  %v5252_v29 = vcombine.low %v3905_v4, %v3915_v25  ;;  %v5314_v8 = vcombine.low %v7674_v31, %v7679_v57  ;;  %v4387_v63 = vrot.slane %v7397_v48, 5  ;;  %v6162_v50 = vld [vmem:[%s6237_s22 + $0x28] sm:$0xf]  ;;  %v5272_v25 = vld [vmem:[%s6237_s22 + $0x30] sm:$0xe] }
 0x11e   : > { %5603 = vmatprep.mubr.msk.bf16.mxu1 %vm631_vm3, %v6110_v19  ;;  %v3924_v12 = vrot.slane %v3923_v24, 4  ;;  %v4303_v19 = vrot.slane %v6161_v11, 5  ;;  %v4307_v61 = vrot.slane %v6162_v50, 5  ;;  %v7702_v48 = vsel %vm6489_vm7, %v5298_v41, %v4384_v6  ;;  %v6114_v11 = vld [vmem:[%s6237_s22 + $0x6c] sm:$0xff]   ;;  %v8053_v41 = vld [vmem:[#allocation6_spill] sm:$0xff] }
 0x11f   : > { %v3939_v34 = vsel %vm6263_vm4, %v3934_v17, %v3938_v46  ;;  %v4386_v24 = vrot.slane %v4384_v6, 4  ;;  %v4301_v43 = vsel %vm6489_vm7, %v5286_v18, %v4300_v56  ;;  %v5287_v51 = vrot.slane %v5271_v2, 9  ;;  %v5284_v50 = vld [vmem:[%s6237_s22 + $0xc0] sm:$0xe]  ;;  %v6178_v31 = vld [vmem:[%s6237_s22 + $0xc8] sm:$0x1] }
 0x120   : > { %v3929_v4 = vsel %vm6263_vm4, %v3924_v12, %v7642_v5  ;;  %v4304_v23 = vsel %vm6489_vm7, %v4302_v9, %v4303_v19  ;;  %v6163_v5 = vld [vmem:[%s6237_s22 + $0x34] sm:$0xf]  ;;  %v6113_v12 = vld [vmem:[%s6237_s22 + $0x60] sm:$0xff]   ;;  %v5288_v18 = vrot.slane %v5272_v25, 9  ;;  %v4394_v9 = vrot.slane %v7511_v35, 5 }
 0x121   : > { %v4314_v16 = vrot.slane %v6163_v5, 5  ;;  %v7713_v62 = vsel %vm6489_vm7, %v4386_v24, %v4387_v63  ;;  %v5253_v46 = vcombine.low %v3929_v4, %v3939_v34  ;;  %v5303_v17 = vcombine.low %v4301_v43, %v4304_v23  ;;  %v5273_v24 = vld [vmem:[%s6237_s22 + $0x3c] sm:$0xe] }
 0x122   : > { %v5315_v56 = vcombine.low %v7702_v48, %v7713_v62  ;;  %v4317_v6 = vrot.slane %v8053_v41, 5  ;;  %v4308_v35 = vsel %vm6489_vm7, %v5287_v51, %v4307_v61  ;;  %v5300_v5 = vrot.slane %v5284_v50, 9 }
 0x123   : > { %v4316_v19 = vrot.slane %v4314_v16, 4  ;;  %v4315_v23 = vsel %vm6489_vm7, %v5288_v18, %v4314_v16  ;;  %v4401_v51 = vrot.slane %v7604_v52, 5  ;;  %v2381_v57 = vshll.u32 %v6178_v31, 16 }
 0x124   : > { %5756 = vmatmul.mubr.msk.bf16.gmra.mrb[24].mxu0 %vm631_vm3, %v5251_v7  ;;  %v5299_v7 = vrot.slane %v5283_v49, 9 }
 0x125   : > { %5604 = vmatmul.mubr.msk.bf16.gmra.mrb[8].mxu1 %vm631_vm3, %v6111_v47  ;;  %5759 = vmatprep.mubr.msk.bf16.mxu0 %vm631_vm3, %v5252_v29  ;;  %v4310_v47 = vrot.slane %v6164_v28, 5  ;;  %v4391_v29 = vrot.slane %v7462_v39, 5  ;;  %v8054_v39 = vld [vmem:[#allocation7_spill] sm:$0xff]  ;;  %v4318_v25 = vsel %vm6489_vm7, %v4316_v19, %v4317_v6  ;;  %v5289_v28 = vrot.slane %v5273_v24, 9 }
 0x126   : > { %5607 = vmatprep.mubr.msk.bf16.mxu1 %vm631_vm3, %v6112_v30  ;;  %v4309_v30 = vrot.slane %v4307_v61, 4  ;;  %v4321_v49 = vrot.slane %v8054_v39, 5  ;;  %v4398_v61 = vrot.slane %v7514_v58, 5  ;;  %v6165_v39 = vld [vmem:[%s6237_s22 + $0x70] sm:$0xf]  ;;  %v4405_v24 = vrot.slane %v7590_v55, 5 }
 0x127   : > { %v7725_v63 = vsel %vm6489_vm7, %v5299_v7, %v4391_v29  ;;  %v4393_v2 = vrot.slane %v4391_v29, 4  ;;  %v5002_v7 = vld [vmem:[%s6237_s22 + $0x6c] sm:$0xf]  ;;  %v8055_v29 = vld [vmem:[#allocation8_spill] sm:$0xff] }
 0x128   : > { %v4311_v34 = vsel %vm6489_vm7, %v4309_v30, %v4310_v47  ;;  %v4323_v47 = vrot.slane %v4321_v49, 4  ;;  %v6115_v30 = vld [vmem:[%s6237_s22 + $0x78] sm:$0xff]   ;;  %v7756_v16 = vsel %vm6489_vm7, %v5300_v5, %v4398_v61  ;;  %v4400_v18 = vrot.slane %v4398_v61, 4 }
 0x129   : > { %v7732_v4 = vsel %vm6489_vm7, %v4393_v2, %v4394_v9  ;;  %v5305_v9 = vcombine.low %v4315_v23, %v4318_v25  ;;  %v2194_v19 = vshrl.u32 %v5002_v7, 16  ;;  %v2197_v41 = vshll.u32 %v5002_v7, 16 }
 0x12a   : > { %v5316_v43 = vcombine.low %v7725_v63, %v7732_v4  ;;  %v7761_v58 = vsel %vm6489_vm7, %v4400_v18, %v4401_v51  ;;  %v4322_v6 = vsel %vm6489_vm7, %v5289_v28, %v4321_v49  ;;  %v4408_v49 = vrot.slane %v7635_v21, 5  ;;  %v6117_v51 = vld [vmem:[%s6237_s22 + $0x90] sm:$0xff]   ;;  %v6118_v21 = vld [vmem:[%s6237_s22 + $0x9c] sm:$0xff]  }
 0x12b   : > { %v5317_v50 = vcombine.low %v7756_v16, %v7761_v58  ;;  %v2196_v23 = vrot.slane %v2194_v19, 4  ;;  %v2199_v25 = vrot.slane %v2197_v41, 5  ;;  %v4407_v7 = vrot.slane %v4405_v24, 4 }
 0x12c   : > { %5760 = vmatmul.mubr.msk.bf16.gmra.mrb[28].mxu0 %vm631_vm3, %v5253_v46  ;;  %v5304_v46 = vcombine.low %v4308_v35, %v4311_v34  ;;  %v2203_v35 = vshll.u32 %v6165_v39, 16  ;;  %v2207_v34 = vshrl.u32 %v6165_v39, 16 }
 0x12d   : > { %5608 = vmatmul.mubr.msk.bf16.gmra.mrb[12].mxu1 %vm631_vm3, %v6113_v12  ;;  %5765 = vmatprep.mubr.msk.bf16.mxu0 %vm631_vm3, %v5303_v17  ;;  %v4324_v12 = vrot.slane %v8055_v29, 5  ;;  %v5285_v17 = vld [vmem:[%s6237_s22 + $0xcc] sm:$0xe]  ;;  %v7783_v55 = vsel %vm6489_vm7, %v4407_v7, %v4408_v49 }
 0x12e   : > { %5611 = vmatprep.mubr.msk.bf16.mxu1 %vm631_vm3, %v6114_v11  ;;  %v6116_v11 = vld [vmem:[%s6237_s22 + $0x84] sm:$0xff]   ;;  %v5301_v52 = vrot.slane %v5285_v17, 9  ;;  %v2209_v28 = vrot.slane %v2207_v34, 4  ;;  %v6166_v17 = vld [vmem:[%s6237_s22 + $0x74] sm:$0x1] }
 0x12f   : > { %v4325_v2 = vsel %vm6489_vm7, %v4323_v47, %v4324_v12  ;;  %v5008_v47 = vld [vmem:[%s6237_s22 + $0x84] sm:$0xf]  ;;  %v2200_v12 = vor.u32 %v2199_v25, %v2196_v23  ;;  %v6120_v34 = vld [vmem:[%s6237_s22 + $0xb4] sm:$0xff]  }
 0x130   : > { %v7778_v5 = vsel %vm6489_vm7, %v5301_v52, %v4405_v24  ;;  %v5306_v61 = vcombine.low %v4322_v6, %v4325_v2  ;;  %v2245_v18 = vshll.u32 %v5008_v47, 16  ;;  %v5011_v6 = vld [vmem:[%s6237_s22 + $0x90] sm:$0xf]  ;;  %v6119_v2 = vld [vmem:[%s6237_s22 + $0xa8] sm:$0xff]  }
 0x131   : > { %v5318_v29 = vcombine.low %v7778_v5, %v7783_v55  ;;  %v2201_v52 = vrot.slane %v2200_v12, 4  ;;  %v2266_v23 = vshrl.u32 %v5011_v6, 16  ;;  %v2269_v25 = vshll.u32 %v5011_v6, 16 }
 0x132   : > { %v2299_v12 = vshll.u32 %v6169_v60, 16 }
 0x133   : > { %v2271_v14 = vrot.slane %v2269_v25, 5  ;;  %v6172_v25 = vld [vmem:[%s6237_s22 + $0xa4] sm:$0x1] }
 0x134   : > { %5766 = vmatmul.mubr.msk.bf16.vlgmr.msra.gmra.mrb[0].mxu0 %vm631_vm3, %v5304_v46  ;;  %v2205_v46 = vrot.slane %v2203_v35, 5  ;;  %v5014_v35 = vld [vmem:[%s6237_s22 + $0x9c] sm:$0xf]  ;;  %v7825_v6 = vrot.slane %v2299_v12, 5 }
 0x135   : > { %5612 = vmatmul.mubr.msk.bf16.gmra.mrb[16].mxu1 %vm631_vm3, %v6115_v30  ;;  %5769 = vmatprep.mubr.msk.bf16.mxu0 %vm631_vm3, %v5305_v9  ;;  %v2213_v30 = vshll.u32 %v6166_v17, 16  ;;  %v2242_v9 = vshrl.u32 %v5008_v47, 16  ;;  %v2293_v47 = vshll.u32 %v5014_v35, 16  ;;  %v6170_v17 = vld [vmem:[%s6237_s22 + $0x8c] sm:$0x1] }
 0x136   : > { %5615 = vmatprep.mubr.msk.bf16.mxu1 %vm631_vm3, %v6116_v11  ;;  %v2210_v13 = vor.u32 %v2209_v28, %v2205_v46  ;;  %v6167_v11 = vld [vmem:[%s6237_s22 + $0x88] sm:$0xf]  ;;  %v2206_v7 = vsel %vm6263_vm4, %v2201_v52, %v2205_v46 }
 0x137   : > { %v2251_v19 = vshll.u32 %v6167_v11, 16  ;;  %v2255_v41 = vshrl.u32 %v6167_v11, 16  ;;  %v2215_v0 = vrot.slane %v2213_v30, 5  ;;  %v2244_v36 = vrot.slane %v2242_v9, 4 }
 0x138   : > { %v2211_v39 = vrot.slane %v2210_v13, 4  ;;  %v2261_v30 = vshll.u32 %v6170_v17, 16  ;;  %v2268_v9 = vrot.slane %v2266_v23, 4  ;;  %v2295_v11 = vrot.slane %v2293_v47, 5 }
 0x139   : > { %v7802_v24 = vrot.slane %v2251_v19, 5  ;;  %v2257_v49 = vrot.slane %v2255_v41, 4  ;;  %v6121_v19 = vld [vmem:[%s6237_s22 + $0xc0] sm:$0xff]  }
 0x13a   : > { %v2216_v46 = vsel %vm6263_vm4, %v2211_v39, %v2215_v0  ;;  %v5017_v39 = vld [vmem:[%s6237_s22 + $0xa8] sm:$0xf] }
 0x13b   : > { %v2258_v13 = vor.u32 %v2257_v49, %v7802_v24  ;;  %v5035_v41 = vcombine.low %v2206_v7, %v2216_v46  ;;  %v2309_v7 = vshll.u32 %v6172_v25, 16  ;;  %v2317_v45 = vshll.u32 %v5017_v39, 16 }
 0x13c   : > { %5770 = vmatmul.mubr.msk.bf16.gmra.mrb[4].mxu0 %vm631_vm3, %v5306_v61  ;;  %v6168_v61 = vld [vmem:[%s6237_s22 + $0x94] sm:$0xf] }
 0x13d   : > { %5616 = vmatmul.mubr.msk.bf16.gmra.mrb[20].mxu1 %vm631_vm3, %v6117_v51  ;;  %5773 = vmatprep.mubr.msk.bf16.mxu0 %vm631_vm3, %v5307_v10  ;;  %v2247_v10 = vrot.slane %v2245_v18, 5  ;;  %v2275_v51 = vshll.u32 %v6168_v61, 16  ;;  %v2279_v28 = vshrl.u32 %v6168_v61, 16  ;;  %v2259_v0 = vrot.slane %v2258_v13, 4 }
 0x13e   : > { %5619 = vmatprep.mubr.msk.bf16.mxu1 %vm631_vm3, %v6118_v21  ;;  %v2290_v21 = vshrl.u32 %v5014_v35, 16  ;;  %v6171_v35 = vld [vmem:[%s6237_s22 + $0x98] sm:$0x1]  ;;  %v2314_v61 = vshrl.u32 %v5017_v39, 16  ;;  %v5023_v39 = vld [vmem:[%s6237_s22 + $0xc0] sm:$0xf] }
 0x13f   : > { %v2248_v15 = vor.u32 %v2247_v10, %v2244_v36  ;;  %v7822_v26 = vrot.slane %v2275_v51, 5  ;;  %v2263_v36 = vrot.slane %v2261_v30, 5  ;;  %v2272_v10 = vor.u32 %v2271_v14, %v2268_v9  ;;  %v5020_v51 = vld [vmem:[%s6237_s22 + $0xb4] sm:$0xf] }
 0x140   : > { %v2292_v18 = vrot.slane %v2290_v21, 4  ;;  %v2327_v21 = vshrl.u32 %v6173_v27, 16  ;;  %v2338_v20 = vshrl.u32 %v5020_v51, 16  ;;  %v2341_v42 = vshll.u32 %v5020_v51, 16 }
 0x141   : > { %v2249_v52 = vrot.slane %v2248_v15, 4  ;;  %v2264_v46 = vsel %vm6263_vm4, %v2259_v0, %v2263_v36  ;;  %v2273_v15 = vrot.slane %v2272_v10, 4  ;;  %v2311_v30 = vrot.slane %v2309_v7, 5 }
 0x142   : > { %v2296_v23 = vor.u32 %v2295_v11, %v2292_v18  ;;  %v2316_v9 = vrot.slane %v2314_v61, 4  ;;  %v2329_v11 = vrot.slane %v2327_v21, 4  ;;  %v6177_v61 = vld [vmem:[%s6237_s22 + $0xbc] sm:$0x1] }
 0x143   : > { %v2254_v47 = vsel %vm6263_vm4, %v2249_v52, %v7802_v24  ;;  %v2278_v0 = vsel %vm6263_vm4, %v2273_v15, %v7822_v26  ;;  %v2357_v22 = vshll.u32 %v6177_v61, 16 }
 0x144   : > { %5774 = vmatmul.mubr.msk.bf16.gmra.mrb[8].mxu0 %vm631_vm3, %v5308_v40  ;;  %v2303_v40 = vshrl.u32 %v6169_v60, 16  ;;  %v2297_v17 = vrot.slane %v2296_v23, 4  ;;  %v5037_v24 = vcombine.low %v2254_v47, %v2264_v46 }
 0x145   : > { %5620 = vmatmul.mubr.msk.bf16.gmra.mrb[24].mxu1 %vm631_vm3, %v6119_v2  ;;  %5777 = vmatprep.mubr.msk.bf16.mxu0 %vm631_vm3, %v5309_v54  ;;  %v2281_v54 = vrot.slane %v2279_v28, 4 }
 0x146   : > { %5623 = vmatprep.mubr.msk.bf16.mxu1 %vm631_vm3, %v6120_v34  ;;  %v2305_v2 = vrot.slane %v2303_v40, 4  ;;  %v2285_v34 = vshll.u32 %v6171_v35, 16  ;;  %v2302_v10 = vsel %vm6263_vm4, %v2297_v17, %v7825_v6  ;;  %v2383_v17 = vrot.slane %v2381_v57, 5 }
 0x147   : > { %v2282_v49 = vor.u32 %v2281_v54, %v7822_v26  ;;  %v2319_v54 = vrot.slane %v2317_v45, 5  ;;  %v6175_v26 = vld [vmem:[%s6237_s22 + $0xb0] sm:$0x1] }
 0x148   : > { %v2306_v28 = vor.u32 %v2305_v2, %v7825_v6  ;;  %v2287_v60 = vrot.slane %v2285_v34, 5  ;;  %v2333_v35 = vshll.u32 %v6175_v26, 16  ;;  %v2362_v34 = vshrl.u32 %v5023_v39, 16 }
 0x149   : > { %v2283_v13 = vrot.slane %v2282_v49, 4  ;;  %v2320_v38 = vor.u32 %v2319_v54, %v2316_v9  ;;  %v2365_v6 = vshll.u32 %v5023_v39, 16  ;;  %v6176_v49 = vld [vmem:[%s6237_s22 + $0xc4] sm:$0xf] }
 0x14a   : > { %v2307_v14 = vrot.slane %v2306_v28, 4  ;;  %v2371_v23 = vshll.u32 %v6176_v49, 16  ;;  %v2375_v25 = vshrl.u32 %v6176_v49, 16  ;;  %v2335_v45 = vrot.slane %v2333_v35, 5 }
 0x14b   : > { %v2288_v36 = vsel %vm6263_vm4, %v2283_v13, %v2287_v60  ;;  %v2321_v51 = vrot.slane %v2320_v38, 4  ;;  %v2359_v60 = vrot.slane %v2357_v22, 5 }
 0x14c   : > { %5778 = vmatmul.mubr.msk.bf16.gmra.mrb[12].mxu0 %vm631_vm3, %v5310_v53  ;;  %v2323_v53 = vshll.u32 %v6173_v27, 16  ;;  %v2312_v59 = vsel %vm6263_vm4, %v2307_v14, %v2311_v30  ;;  %v5038_v44 = vcombine.low %v2278_v0, %v2288_v36  ;;  %v2364_v27 = vrot.slane %v2362_v34, 4 }
 0x14d   : > { %5624 = vmatmul.mubr.msk.bf16.gmra.mrb[28].mxu1 %vm631_vm3, %v6121_v19  ;;  %5781 = vmatprep.mubr.msk.bf16.mxu0 %vm631_vm3, %v5311_v33  ;;  %v6174_v33 = vld [vmem:[%s6237_s22 + $0xb8] sm:$0xf]  ;;  %v2340_v19 = vrot.slane %v2338_v20, 4  ;;  %v2373_v21 = vrot.slane %v2371_v23, 5  ;;  %v2377_v47 = vrot.slane %v2375_v25, 4 }
 0x14e   : > { %5645 = vmatprep.mubr.msk.bf16.mxu1 %vm631_vm3, %v5035_v41  ;;  %v2347_v12 = vshll.u32 %v6174_v33, 16  ;;  %v2351_v40 = vshrl.u32 %v6174_v33, 16  ;;  %v2325_v18 = vrot.slane %v2323_v53, 5  ;;  %v2343_v41 = vrot.slane %v2341_v42, 5 }
 0x14f   : > { %v2367_v53 = vrot.slane %v2365_v6, 5 }
 0x150   : > { %v2349_v52 = vrot.slane %v2347_v12, 5  ;;  %v2353_v2 = vrot.slane %v2351_v40, 4  ;;  %v2326_v20 = vsel %vm6263_vm4, %v2321_v51, %v2325_v18  ;;  %v2378_v12 = vor.u32 %v2377_v47, %v2373_v21 }
 0x151   : > { %v2368_v33 = vor.u32 %v2367_v53, %v2364_v27 }
 0x152   : > { %v2354_v7 = vor.u32 %v2353_v2, %v2349_v52  ;;  %v2379_v13 = vrot.slane %v2378_v12, 4 }
 0x153   : > { %v2369_v40 = vrot.slane %v2368_v33, 4 }
 0x154   : > { %5782 = vmatmul.mubr.msk.bf16.gmra.mrb[16].mxu0 %vm631_vm3, %v5312_v37  ;;  %v2330_v37 = vor.u32 %v2329_v11, %v2325_v18  ;;  %v2355_v15 = vrot.slane %v2354_v7, 4  ;;  %v2384_v9 = vsel %vm6263_vm4, %v2379_v13, %v2383_v17 }
 0x155   : > { %5646 = vmatmul.mubr.msk.bf16.vlgmr.msra.gmra.mrb[16].mxu1 %vm631_vm3, %v7631_v1  ;;  %5785 = vmatprep.mubr.msk.bf16.mxu0 %vm631_vm3, %v5313_v3  ;;  %v2344_v1 = vor.u32 %v2343_v41, %v2340_v19  ;;  %v5039_v3 = vcombine.low %v2302_v10, %v2312_v59  ;;  %v2374_v30 = vsel %vm6263_vm4, %v2369_v40, %v2373_v21 }
 0x156   : > { %5649 = vmatprep.mubr.msk.bf16.mxu1 %vm631_vm3, %v5037_v24  ;;  %v2331_v28 = vrot.slane %v2330_v37, 4  ;;  %v2360_v48 = vsel %vm6263_vm4, %v2355_v15, %v2359_v60  ;;  %v5042_v14 = vcombine.low %v2374_v30, %v2384_v9 }
 0x157   : > { %v2345_v46 = vrot.slane %v2344_v1, 4 }
 0x158   : > { %v2336_v42 = vsel %vm6263_vm4, %v2331_v28, %v2335_v45 }
 0x159   : > { %v5040_v62 = vcombine.low %v2326_v20, %v2336_v42 }
 0x15c   : > { %5786 = vmatmul.mubr.msk.bf16.gmra.mrb[20].mxu0 %vm631_vm3, %v5314_v8  ;;  %v2350_v8 = vsel %vm6263_vm4, %v2345_v46, %v2349_v52 }
 0x15d   : > { %5650 = vmatmul.mubr.msk.bf16.gmra.mrb[20].mxu1 %vm631_vm3, %v5038_v44  ;;  %5789 = vmatprep.mubr.msk.bf16.mxu0 %vm631_vm3, %v5315_v56  ;;  %v5041_v56 = vcombine.low %v2350_v8, %v2360_v48 }
 0x15e   : > { %5653 = vmatprep.mubr.msk.bf16.mxu1 %vm631_vm3, %v5039_v3 }
 0x164   : > { %5790 = vmatmul.mubr.msk.bf16.gmra.mrb[24].mxu0 %vm631_vm3, %v5316_v43 }
 0x165   : > { %5654 = vmatmul.mubr.msk.bf16.gmra.mrb[24].mxu1 %vm631_vm3, %v5040_v62  ;;  %5793 = vmatprep.mubr.msk.bf16.mxu0 %vm631_vm3, %v5317_v50 }
 0x166   : > { %5657 = vmatprep.mubr.msk.bf16.mxu1 %vm631_vm3, %v5041_v56 }
 0x16c   : > { %5794 = vmatmul.mubr.msk.bf16.gmra.mrb[28].mxu0 %vm631_vm3, %v5318_v29 }
 0x16d   : > { %5658 = vmatmul.mubr.msk.bf16.gmra.mrb[28].mxu1 %vm631_vm3, %v5042_v14 }
 0x1e8   : > { %v5597_v63 = vpop.f32.mrb[0].mxu1 }
 0x1e9   : > { %v1794_v4 = vpop.f32.mrb[1].mxu1 }
 0x1ea   : > { %v5598_v43 = vpop.f32.mrb[2].mxu1 }
 0x1eb   : > { %v1797_v16 = vpop.f32.mrb[3].mxu1 }
 0x1f0   : > { %v5601_v58 = vpop.f32.mrb[4].mxu1 }
 0x1f1   : > { %v1810_v50 = vpop.f32.mrb[5].mxu1 }
 0x1f2   : > { %v5602_v54 = vpop.f32.mrb[6].mxu1 }
 0x1f3   : > { %v1813_v18 = vpop.f32.mrb[7].mxu1 }
 0x1f8   : > { %v5605_v11 = vpop.f32.mrb[8].mxu1 }
 0x1f9   : > { %v1826_v32 = vpop.f32.mrb[9].mxu1 }
 0x1fa   : > { %v5606_v24 = vpop.f32.mrb[10].mxu1 }
 0x1fb   : > { %v1829_v19 = vpop.f32.mrb[11].mxu1 }
 0x200   : > { %v5609_v41 = vpop.f32.mrb[12].mxu1 }
 0x201   : > { %v1842_v52 = vpop.f32.mrb[13].mxu1 }
 0x202   : > { %v5610_v5 = vpop.f32.mrb[14].mxu1 }
 0x203   : > { %v1845_v55 = vpop.f32.mrb[15].mxu1 }
 0x207   : > { %v5767_v29 = vpop.f32.mrb[0].mxu0 }
 0x208   : > { %v5799_v2 = vadd.f32 %v5767_v29, %v5597_v63  ;;  %v4545_v39 = vpop.f32.mrb[1].mxu0 }
 0x209   : > { %v5800_v0 = vadd.f32 %v4545_v39, %v1794_v4  ;;  %v5768_v36 = vpop.f32.mrb[2].mxu0 }
 0x20a   : > { %4706 = vst.msk [vmem:[%s7917_s14 + $0x10] sm:$0xff] %vm631_vm3, %v5799_v2  ;;  %v5801_v10 = vadd.f32 %v5768_v36, %v5598_v43  ;;  %v4548_v59 = vpop.f32.mrb[3].mxu0 }
 0x20b   : > { %4704 = vst.msk [vmem:[%s7917_s14] sm:$0xff] %vm631_vm3, %v5800_v0  ;;  %v5802_v38 = vadd.f32 %v4548_v59, %v1797_v16 }
 0x20c   : > { %4707 = vst.msk [vmem:[%s7917_s14 + $0x18] sm:$0xff] %vm631_vm3, %v5801_v10 }
 0x20d   : > { %4705 = vst.msk [vmem:[%s7917_s14 + $0x8] sm:$0xff] %vm631_vm3, %v5802_v38 }
 0x20f   : > { %v5771_v37 = vpop.f32.mrb[4].mxu0 }
 0x210   : > { %v5803_v26 = vadd.f32 %v5771_v37, %v5601_v58  ;;  %v4561_v35 = vpop.f32.mrb[5].mxu0 }
 0x211   : > { %v5804_v34 = vadd.f32 %v4561_v35, %v1810_v50  ;;  %v5772_v6 = vpop.f32.mrb[6].mxu0 }
 0x212   : > { %4710 = vst.msk [vmem:[%s7917_s14 + $0x30] sm:$0xff] %vm631_vm3, %v5803_v26  ;;  %v5805_v49 = vadd.f32 %v5772_v6, %v5602_v54  ;;  %v4564_v23 = vpop.f32.mrb[7].mxu0 }
 0x213   : > { %4708 = vst.msk [vmem:[%s7917_s14 + $0x20] sm:$0xff] %vm631_vm3, %v5804_v34  ;;  %v5806_v25 = vadd.f32 %v4564_v23, %v1813_v18 }
 0x214   : > { %4711 = vst.msk [vmem:[%s7917_s14 + $0x38] sm:$0xff] %vm631_vm3, %v5805_v49 }
 0x215   : > { %4709 = vst.msk [vmem:[%s7917_s14 + $0x28] sm:$0xff] %vm631_vm3, %v5806_v25 }
 0x217   : > { %v5775_v1 = vpop.f32.mrb[8].mxu0 }
 0x218   : > { %v5807_v7 = vadd.f32 %v5775_v1, %v5605_v11  ;;  %v4577_v61 = vpop.f32.mrb[9].mxu0 }
 0x219   : > { %v5808_v22 = vadd.f32 %v4577_v61, %v1826_v32  ;;  %v5776_v44 = vpop.f32.mrb[10].mxu0 }
 0x21a   : > { %4714 = vst.msk [vmem:[%s7917_s14 + $0x50] sm:$0xff] %vm631_vm3, %v5807_v7  ;;  %v5809_v3 = vadd.f32 %v5776_v44, %v5606_v24  ;;  %v4580_v51 = vpop.f32.mrb[11].mxu0 }
 0x21b   : > { %4712 = vst.msk [vmem:[%s7917_s14 + $0x40] sm:$0xff] %vm631_vm3, %v5808_v22  ;;  %v5810_v28 = vadd.f32 %v4580_v51, %v1829_v19 }
 0x21c   : > { %4715 = vst.msk [vmem:[%s7917_s14 + $0x58] sm:$0xff] %vm631_vm3, %v5809_v3 }
 0x21d   : > { %4713 = vst.msk [vmem:[%s7917_s14 + $0x48] sm:$0xff] %vm631_vm3, %v5810_v28 }
 0x21f   : > { %v5779_v45 = vpop.f32.mrb[12].mxu0 }
 0x220   : > { %v5811_v27 = vadd.f32 %v5779_v45, %v5609_v41  ;;  %v4593_v53 = vpop.f32.mrb[13].mxu0 }
 0x221   : > { %v5812_v21 = vadd.f32 %v4593_v53, %v1842_v52  ;;  %v5780_v47 = vpop.f32.mrb[14].mxu0 }
 0x222   : > { %4718 = vst.msk [vmem:[%s7917_s14 + $0x70] sm:$0xff] %vm631_vm3, %v5811_v27  ;;  %v5813_v46 = vadd.f32 %v5780_v47, %v5610_v5  ;;  %v4596_v15 = vpop.f32.mrb[15].mxu0 }
 0x223   : > { %4716 = vst.msk [vmem:[%s7917_s14 + $0x60] sm:$0xff] %vm631_vm3, %v5812_v21  ;;  %v5814_v60 = vadd.f32 %v4596_v15, %v1845_v55 }
 0x224   : > { %4719 = vst.msk [vmem:[%s7917_s14 + $0x78] sm:$0xff] %vm631_vm3, %v5813_v46 }
 0x225   : > { %4717 = vst.msk [vmem:[%s7917_s14 + $0x68] sm:$0xff] %vm631_vm3, %v5814_v60 }
 0x227   : > { %v5783_v20 = vpop.f32.mrb[16].mxu0 }
 0x228   : > { %v5647_v42 = vpop.f32.mrb[16].mxu1  ;;  %v4609_v33 = vpop.f32.mrb[17].mxu0 }
 0x229   : > { %v5815_v12 = vadd.f32 %v5783_v20, %v5647_v42  ;;  %v2584_v31 = vpop.f32.mrb[17].mxu1  ;;  %v5784_v57 = vpop.f32.mrb[18].mxu0 }
 0x22a   : > { %v5816_v8 = vadd.f32 %v4609_v33, %v2584_v31  ;;  %v5648_v48 = vpop.f32.mrb[18].mxu1  ;;  %v4612_v62 = vpop.f32.mrb[19].mxu0 }
 0x22b   : > { %4722 = vst.msk [vmem:[%s7917_s14 + $0x90] sm:$0xff] %vm631_vm3, %v5815_v12  ;;  %v5817_v56 = vadd.f32 %v5784_v57, %v5648_v48  ;;  %v2587_v40 = vpop.f32.mrb[19].mxu1 }
 0x22c   : > { %4720 = vst.msk [vmem:[%s7917_s14 + $0x80] sm:$0xff] %vm631_vm3, %v5816_v8  ;;  %v5818_v13 = vadd.f32 %v4612_v62, %v2587_v40 }
 0x22d   : > { %4723 = vst.msk [vmem:[%s7917_s14 + $0x98] sm:$0xff] %vm631_vm3, %v5817_v56 }
 0x22e   : > { %4721 = vst.msk [vmem:[%s7917_s14 + $0x88] sm:$0xff] %vm631_vm3, %v5818_v13 }
 0x22f   : > { %v5787_v17 = vpop.f32.mrb[20].mxu0 }
 0x230   : > { %v5651_v30 = vpop.f32.mrb[20].mxu1  ;;  %v4625_v9 = vpop.f32.mrb[21].mxu0 }
 0x231   : > { %v5819_v14 = vadd.f32 %v5787_v17, %v5651_v30  ;;  %v2600_v63 = vpop.f32.mrb[21].mxu1  ;;  %v5788_v4 = vpop.f32.mrb[22].mxu0 }
 0x232   : > { %v5820_v43 = vadd.f32 %v4625_v9, %v2600_v63  ;;  %v5652_v16 = vpop.f32.mrb[22].mxu1  ;;  %v4628_v58 = vpop.f32.mrb[23].mxu0 }
 0x233   : > { %4726 = vst.msk [vmem:[%s7917_s14 + $0xb0] sm:$0xff] %vm631_vm3, %v5819_v14  ;;  %v5821_v50 = vadd.f32 %v5788_v4, %v5652_v16  ;;  %v2603_v54 = vpop.f32.mrb[23].mxu1 }
 0x234   : > { %4724 = vst.msk [vmem:[%s7917_s14 + $0xa0] sm:$0xff] %vm631_vm3, %v5820_v43  ;;  %v5822_v18 = vadd.f32 %v4628_v58, %v2603_v54 }
 0x235   : > { %4727 = vst.msk [vmem:[%s7917_s14 + $0xb8] sm:$0xff] %vm631_vm3, %v5821_v50 }
 0x236   : > { %4725 = vst.msk [vmem:[%s7917_s14 + $0xa8] sm:$0xff] %vm631_vm3, %v5822_v18 }
 0x237   : > { %v5791_v11 = vpop.f32.mrb[24].mxu0 }
 0x238   : > { %v5655_v32 = vpop.f32.mrb[24].mxu1  ;;  %v4641_v24 = vpop.f32.mrb[25].mxu0 }
 0x239   : > { %v5823_v19 = vadd.f32 %v5791_v11, %v5655_v32  ;;  %v2616_v41 = vpop.f32.mrb[25].mxu1  ;;  %v5792_v52 = vpop.f32.mrb[26].mxu0 }
 0x23a   : > { %v5824_v5 = vadd.f32 %v4641_v24, %v2616_v41  ;;  %v5656_v55 = vpop.f32.mrb[26].mxu1  ;;  %v4644_v29 = vpop.f32.mrb[27].mxu0 }
 0x23b   : > { %4730 = vst.msk [vmem:[%s7917_s14 + $0xd0] sm:$0xff] %vm631_vm3, %v5823_v19  ;;  %v5825_v2 = vadd.f32 %v5792_v52, %v5656_v55  ;;  %v2619_v39 = vpop.f32.mrb[27].mxu1 }
 0x23c   : > { %4728 = vst.msk [vmem:[%s7917_s14 + $0xc0] sm:$0xff] %vm631_vm3, %v5824_v5  ;;  %v5826_v0 = vadd.f32 %v4644_v29, %v2619_v39 }
 0x23d   : > { %4731 = vst.msk [vmem:[%s7917_s14 + $0xd8] sm:$0xff] %vm631_vm3, %v5825_v2 }
 0x23e   : > { %4729 = vst.msk [vmem:[%s7917_s14 + $0xc8] sm:$0xff] %vm631_vm3, %v5826_v0 }
 0x23f   : > { %v5795_v36 = vpop.f32.mrb[28].mxu0 }
 0x240   : > { %v5659_v10 = vpop.f32.mrb[28].mxu1  ;;  %v4657_v59 = vpop.f32.mrb[29].mxu0 }
 0x241   : > { %v5827_v38 = vadd.f32 %v5795_v36, %v5659_v10  ;;  %v2632_v37 = vpop.f32.mrb[29].mxu1  ;;  %v5796_v26 = vpop.f32.mrb[30].mxu0 }
 0x242   : > { %v5828_v35 = vadd.f32 %v4657_v59, %v2632_v37  ;;  %v5660_v34 = vpop.f32.mrb[30].mxu1  ;;  %v4660_v6 = vpop.f32.mrb[31].mxu0 }
 0x243   : > { %4734 = vst.msk [vmem:[%s7917_s14 + $0xf0] sm:$0xff] %vm631_vm3, %v5827_v38  ;;  %v5829_v49 = vadd.f32 %v5796_v26, %v5660_v34  ;;  %v2635_v23 = vpop.f32.mrb[31].mxu1 }
 0x244   : > { %4732 = vst.msk [vmem:[%s7917_s14 + $0xe0] sm:$0xff] %vm631_vm3, %v5828_v35  ;;  %v5830_v25 = vadd.f32 %v4660_v6, %v2635_v23 }
 0x245   : > { %4735 = vst.msk [vmem:[%s7917_s14 + $0xf8] sm:$0xff] %vm631_vm3, %v5829_v49 }
 0x246   : > { %4733 = vst.msk [vmem:[%s7917_s14 + $0xe8] sm:$0xff] %vm631_vm3, %v5830_v25 }
 0x247 PF: > { %s12_s9 = sadd.s32 1, %s6185_s9  }
 0x248   : > { %p9_p4 = scmp.ge.s32.totalorder %s12_s9, 4  }
 0x24a   :  { %11 = sbr.rel (!%p9_p4) target bundleno = 1 (0x1), region = 68 }

</bundles_post_ra>
